<compile_context>
chip_gen: v6e
topology: v6e:2x2x1
jax: 0.10.0
libtpu: 0.0.40
codegen_flags: <defaults>
</compile_context>

<pallas_src>
import math

import jax
import jax.numpy as jnp
from jax import lax
from jax.experimental import pallas as pl
from jax.experimental.pallas import tpu as pltpu

N_CLASSES = 10
N_CHANNEL = 3
HIDDEN = 128
N_DIM = 128
N_HIDDEN = 4 * N_DIM
SCALE = 1.0
BN_EPS = 1e-5
TEMP = 0.05
NEG_SLOPE = 0.2
HIGHEST = lax.Precision.HIGHEST


def _leaky_relu(x, slope=NEG_SLOPE):
    return jnp.where(x >= 0, x, slope * x)


def _sigmoid(x):
    # explicit exp-based form (EUP slot); avoids relying on a logistic lowering.
    return 1.0 / (1.0 + jnp.exp(-x))


def _round_up(a, m):
    return ((a + m - 1) // m) * m


def _device_tiling():
    """(pixel-tile cap, scoped-VMEM limit) per TPU generation.

    v5e / v6e have 128 MiB physical VMEM -> big tiles + 64 MiB scoped limit.
    v7x only has 64 MiB per TensorCore -> cap the tile at 4096 / 40 MiB.
    Unknown hardware falls back to the conservative (v7x-safe) config.
    """
    vmem_bytes = None
    try:
        vmem_bytes = getattr(pltpu.get_tpu_info(), "vmem_capacity_bytes", None)
    except Exception:
        vmem_bytes = None
    if vmem_bytes is not None and vmem_bytes >= 100 * 1024 * 1024:
        return 8192, 64 * 1024 * 1024          # v5e / v6e (128 MiB VMEM)
    return 4096, 40 * 1024 * 1024              # v7x (64 MiB VMEM) or unknown


# ---------------------------------------------------------------------------
# Pallas kernels (color path).  Layout: channels on sublanes, pixels on lanes.
# Per grid step (b, t):
#   x_ref    : (1, 3, T)       pixel tile of image b (lane-dense)
#   ctx_ref  : (1, 128, 1)     BN1-folded per-batch context: rstd1*(ctx[b]-mean1)
#   w1_ref   : (128, 3)  f32   BN1-folded color_enc1 weight: rstd1*W1
#   w2_ref   : (128,128) bf16  BN2-folded body conv weight:  rstd2*W2
#   bias2_ref: (128, 1)  f32   BN2 folded bias:              -mean2*rstd2
#   wcr_ref  : (6, 128)  f32   merged c_regress weight (rows 0-2 scale, 3-5 shift)
#   pb_ref   : (3, B)    SMEM  per-batch scalars [g_scale; g_shift; prob]
# ---------------------------------------------------------------------------
def _make_stats_kernel(hw, t_size, needs_mask):
    """Accumulate per-batch sum_p g and Gram G = g @ g^T of the first block's
    activation g = lrelu(bn1(W1@x + ctx)).  BN2 statistics are recovered in
    the wrapper as sum f2 = W2 @ sum_g and sumsq f2 = rowsum((W2@G) * W2)."""

    def kernel(x_ref, ctx_ref, w1_ref, sumg_ref, gram_ref):
        @pl.when(pl.program_id(1) == 0)
        def _init():
            sumg_ref[...] = jnp.zeros_like(sumg_ref)
            gram_ref[...] = jnp.zeros_like(gram_ref)

        f1 = jnp.dot(w1_ref[...], x_ref[0], preferred_element_type=jnp.float32)
        g = _leaky_relu(f1 + ctx_ref[0])                         # (128, T)
        if needs_mask:
            # zero padded lanes so they don't pollute the BN statistics
            pix = (pl.program_id(1) * t_size
                   + lax.broadcasted_iota(jnp.int32, (1, t_size), 1))
            g = jnp.where(pix < hw, g, 0.0)
        gb = g.astype(jnp.bfloat16)
        sumg_ref[0] += jnp.sum(g, axis=1, keepdims=True)         # (128, 1)
        gram_ref[0] += lax.dot_general(                          # (128,128), K = T
            gb, gb, (((1,), (1,)), ((), ())),
            preferred_element_type=jnp.float32)

    return kernel


def _make_final_kernel(out_dtype):
    def kernel(x_ref, ctx_ref, bias2_ref, pb_ref, w1_ref, w2_ref, wcr_ref,
               scale_ref, shift_ref):
        b = pl.program_id(0)

        f1 = jnp.dot(w1_ref[...], x_ref[0], preferred_element_type=jnp.float32)
        g = _leaky_relu(f1 + ctx_ref[0])                          # BN1 folded
        h2 = jnp.dot(w2_ref[...], g.astype(jnp.bfloat16),
                     preferred_element_type=jnp.float32)
        h2 = _leaky_relu(h2 + bias2_ref[...])                     # BN2 folded

        # merged c_regress head: one (6,128)@(128,T) matmul + one packed sigmoid
        raw = jnp.dot(wcr_ref[...], h2, preferred_element_type=jnp.float32)

        g_scale = pb_ref[0, b]
        g_shift = pb_ref[1, b]
        prob = pb_ref[2, b]                                       # relaxed bernoulli
        rows = lax.broadcasted_iota(jnp.int32, (2 * N_CHANNEL, 1), 0)
        offs = jnp.where(rows < N_CHANNEL, g_scale, g_shift)      # (6, 1)

        adj = prob * (_sigmoid(raw + offs) - 0.5)                 # (6, T)
        # scale_out = 1 - prob + prob*(SCALE*(sig-0.5)+1) = 1 + prob*SCALE*(sig-0.5)
        scale_ref[0] = (SCALE * adj[:N_CHANNEL] + 1.0).astype(out_dtype)
        shift_ref[0] = adj[N_CHANNEL:].astype(out_dtype)

    return kernel


# ---------------------------------------------------------------------------
# Wrapper helpers
# ---------------------------------------------------------------------------
def _bn_batch(h):
    """BatchNorm1d with batch statistics (track_running_stats=False, no affine)."""
    mean = jnp.mean(h, axis=0, keepdims=True)
    var = jnp.mean(jnp.square(h - mean), axis=0, keepdims=True)
    return (h - mean) * lax.rsqrt(var + BN_EPS)


def _global_factors(onehot, noise, u, c, params):
    """Noise-encoder MLP (rows == batch -> plain XLA) + relaxed-bernoulli prob."""
    h = jnp.concatenate([onehot, noise], axis=1) @ params["w_ne1"]
    h = _leaky_relu(_bn_batch(h))
    h = h @ params["w_ne2"]
    h = _leaky_relu(_bn_batch(h))
    gfactor = h @ params["w_nr"]                                  # (B, 2)
    g_scale, g_shift = gfactor[:, 0], gfactor[:, 1]
    logit_u = jnp.log(u) - jnp.log1p(-u)
    prob = jax.nn.sigmoid((logit_u + params["logits"][c]) / TEMP)
    return g_scale, g_shift, prob


# ---------------------------------------------------------------------------
# Forward
# ---------------------------------------------------------------------------
def color_augmentation_forward(x, noise, c, u, params, *, out_dtype=jnp.float32):
    B, C, H, W = x.shape
    assert C == N_CHANNEL
    HW = H * W
    npix = B * HW
    f32 = jnp.float32

    tile_cap, vmem_limit = _device_tiling()
    T = min(tile_cap, _round_up(HW, 128))
    n_tiles = (HW + T - 1) // T
    HW_pad = n_tiles * T

    onehot = jax.nn.one_hot(c, N_CLASSES, dtype=f32)
    g_scale, g_shift, prob = _global_factors(onehot, noise, u, c, params)
    ctx = onehot @ params["w_ctx"].T                              # (B, 128)

    # lane-dense pixel layout (free reshape of NCHW), zero-padded to tile grid
    x3 = x.reshape(B, C, HW).astype(f32)
    if HW_pad != HW:
        x3 = jnp.pad(x3, ((0, 0), (0, 0), (0, HW_pad - HW)))

    w1 = params["w_c1"]                                           # (128, 3)
    w2 = params["w_c2"]                                           # (128, 128)
    wcr = params["w_cr"]                                          # (6, 128)

    # ---- BN1 stats from tiny x moments (f1 = W1@x + ctx[b] is affine in x) ----
    S = jnp.sum(x3, axis=2)                                       # (B, 3)  zero pad is free
    M = jnp.einsum('bcp,bdp->cd', x3, x3, precision=HIGHEST)      # (3, 3)
    WS = jnp.dot(S, w1.T, precision=HIGHEST)                      # (B, 128) = sum_p (W1@x)
    sum1 = jnp.sum(WS, axis=0) + HW * jnp.sum(ctx, axis=0)
    sumsq1 = (jnp.sum(jnp.dot(w1, M, precision=HIGHEST) * w1, axis=1)
              + 2.0 * jnp.sum(ctx * WS, axis=0)
              + HW * jnp.sum(ctx * ctx, axis=0))
    mean1 = sum1 / npix
    var1 = jnp.maximum(sumsq1 / npix - mean1 * mean1, 0.0)
    rstd1 = lax.rsqrt(var1 + BN_EPS)

    w1f = w1 * rstd1[:, None]                                     # BN1 folded into W1
    ctxf = ((ctx - mean1[None, :]) * rstd1[None, :]).reshape(B, HIDDEN, 1)

    # ---- BlockSpecs ----
    grid = (B, n_tiles)
    x_spec = pl.BlockSpec((1, C, T), lambda b, t: (b, 0, t))
    ctx_spec = pl.BlockSpec((1, HIDDEN, 1), lambda b, t: (b, 0, 0))
    w1_spec = pl.BlockSpec((HIDDEN, C), lambda b, t: (0, 0))
    w2_spec = pl.BlockSpec((HIDDEN, HIDDEN), lambda b, t: (0, 0))
    wcr_spec = pl.BlockSpec((2 * N_CHANNEL, HIDDEN), lambda b, t: (0, 0))
    vec_spec = pl.BlockSpec((HIDDEN, 1), lambda b, t: (0, 0))
    smem_spec = pl.BlockSpec(memory_space=pltpu.MemorySpace.SMEM)
    sumg_spec = pl.BlockSpec((1, HIDDEN, 1), lambda b, t: (b, 0, 0))
    gram_spec = pl.BlockSpec((1, HIDDEN, HIDDEN), lambda b, t: (b, 0, 0))
    out_spec = pl.BlockSpec((1, C, T), lambda b, t: (b, 0, t))

    # ---- Pallas pass 1: per-batch Gram stats of g (for the second BatchNorm2d).
    # Per-batch partial outputs make the batch axis race-free -> "parallel"
    # (both v7x TensorCores participate); the tile axis is the reduction.
    sumg_b, gram_b = pl.pallas_call(
        _make_stats_kernel(HW, T, HW_pad != HW),
        grid=grid,
        in_specs=[x_spec, ctx_spec, w1_spec],
        out_specs=(sumg_spec, gram_spec),
        out_shape=(jax.ShapeDtypeStruct((B, HIDDEN, 1), f32),
                   jax.ShapeDtypeStruct((B, HIDDEN, HIDDEN), f32)),
        compiler_params=pltpu.CompilerParams(
            dimension_semantics=("parallel", "arbitrary"),
            vmem_limit_bytes=vmem_limit),
    )(x3, ctxf, w1f)

    sum_g = jnp.sum(sumg_b, axis=0)[:, 0]                         # (128,)
    G = jnp.sum(gram_b, axis=0)                                   # (128, 128)
    sum2 = jnp.dot(w2, sum_g, precision=HIGHEST)                  # sum of f2 = W2@g
    sumsq2 = jnp.sum(jnp.dot(w2, G, precision=HIGHEST) * w2, axis=1)
    mean2 = sum2 / npix
    var2 = jnp.maximum(sumsq2 / npix - mean2 * mean2, 0.0)
    rstd2 = lax.rsqrt(var2 + BN_EPS)

    w2f = (w2 * rstd2[:, None]).astype(jnp.bfloat16)              # BN2 folded into W2
    bias2 = (-mean2 * rstd2).reshape(HIDDEN, 1)

    pb = jnp.stack([g_scale, g_shift, prob], axis=0)              # (3, B) SMEM table

    # ---- Pallas pass 2: normalize, c_regress, combine, relaxed-bernoulli mix ----
    scale3, shift3 = pl.pallas_call(
        _make_final_kernel(out_dtype),
        grid=grid,
        in_specs=[x_spec, ctx_spec, vec_spec, smem_spec,
                  w1_spec, w2_spec, wcr_spec],
        out_specs=(out_spec, out_spec),
        out_shape=(jax.ShapeDtypeStruct((B, C, HW_pad), out_dtype),
                   jax.ShapeDtypeStruct((B, C, HW_pad), out_dtype)),
        compiler_params=pltpu.CompilerParams(
            dimension_semantics=("parallel", "parallel"),
            vmem_limit_bytes=vmem_limit),
    )(x3, ctxf, bias2, pb, w1f, w2f, wcr)

    if HW_pad != HW:
        scale3 = scale3[:, :, :HW]
        shift3 = shift3[:, :, :HW]
    # free reshapes back to NCHW
    return scale3.reshape(B, C, H, W), shift3.reshape(B, C, H, W)


# ---------------------------------------------------------------------------
# Pure-JAX float32 reference (mirrors the PyTorch forward, eval-mode dropout)
# ---------------------------------------------------------------------------
def color_augmentation_reference(x, noise, c, u, params):
    B, C, H, W = x.shape
    f32 = jnp.float32
    onehot = jax.nn.one_hot(c, N_CLASSES, dtype=f32)
    g_scale, g_shift, prob = _global_factors(onehot, noise, u, c, params)
    g_scale = g_scale.reshape(B, 1, 1, 1)
    g_shift = g_shift.reshape(B, 1, 1, 1)
    prob = prob.reshape(B, 1, 1, 1)

    def bn2d(f):
        mean = jnp.mean(f, axis=(0, 2, 3), keepdims=True)
        var = jnp.mean(jnp.square(f - mean), axis=(0, 2, 3), keepdims=True)
        return (f - mean) * lax.rsqrt(var + BN_EPS)

    f1 = jnp.einsum('oc,bchw->bohw', params["w_c1"], x.astype(f32),
                    precision=HIGHEST)
    f1 = f1 + (onehot @ params["w_ctx"].T).reshape(B, HIDDEN, 1, 1)
    g = _leaky_relu(bn2d(f1))
    f2 = jnp.einsum('oc,bchw->bohw', params["w_c2"], g, precision=HIGHEST)
    q = _leaky_relu(bn2d(f2))
    factor = jnp.einsum('oc,bchw->bohw', params["w_cr"], q, precision=HIGHEST)
    scale, shift = factor[:, :N_CHANNEL], factor[:, N_CHANNEL:]
    scale = SCALE * (jax.nn.sigmoid(g_scale + scale) - 0.5) + 1.0
    shift = jax.nn.sigmoid(g_shift + shift) - 0.5
    scale = 1.0 - prob + prob * scale
    shift = prob * shift
    return scale, shift


# ---------------------------------------------------------------------------
# Parameter initialization (mirrors ColorAugmentation.reset()):
# kaiming_normal_(a=0.2, mode='fan_out') for convs/linears, zero for
# c_regress / n_regress weights and logits.  Conv weights stored as
# (out_channels, in_channels); Linear weights pre-transposed to (in, out).
# ---------------------------------------------------------------------------
def _kaiming_normal(key, shape, fan_out, a=NEG_SLOPE):
    gain = math.sqrt(2.0 / (1.0 + a * a))
    std = gain / math.sqrt(fan_out)
    return std * jax.random.normal(key, shape, dtype=jnp.float32)


def init_params(key):
    ks = jax.random.split(key, 5)
    return {
        "w_ctx": _kaiming_normal(ks[0], (HIDDEN, N_CLASSES), fan_out=HIDDEN),
        "w_c1": _kaiming_normal(ks[1], (HIDDEN, N_CHANNEL), fan_out=HIDDEN),
        "w_c2": _kaiming_normal(ks[2], (HIDDEN, HIDDEN), fan_out=HIDDEN),
        "w_cr": jnp.zeros((2 * N_CHANNEL, HIDDEN), jnp.float32),
        "w_ne1": _kaiming_normal(ks[3], (N_DIM + N_CLASSES, N_HIDDEN),
                                 fan_out=N_HIDDEN),
        "w_ne2": _kaiming_normal(ks[4], (N_HIDDEN, N_HIDDEN), fan_out=N_HIDDEN),
        "w_nr": jnp.zeros((N_HIDDEN, 2), jnp.float32),
        "logits": jnp.zeros((N_CLASSES,), jnp.float32),
    }


if __name__ == "__main__":
    key = jax.random.PRNGKey(0)
    k_data, k_p, k_cr, k_nr, k_lg = jax.random.split(key, 5)

    params = init_params(k_p)
    # Perturb the zero-initialized heads so the smoke test exercises the full
    # sigmoid / mixing math (reset() alone gives trivially scale==1, shift==0).
    params["w_cr"] = 0.05 * jax.random.normal(k_cr, (2 * N_CHANNEL, HIDDEN),
                                              jnp.float32)
    params["w_nr"] = 0.05 * jax.random.normal(k_nr, (N_HIDDEN, 2), jnp.float32)
    params["logits"] = 0.5 * jax.random.normal(k_lg, (N_CLASSES,), jnp.float32)

    fwd = jax.jit(color_augmentation_forward)

    def run_case(shape, tag):
        B, C, H, W = shape
        kk = jax.random.fold_in(k_data, tag)
        kx, kn, kc, ku = jax.random.split(kk, 4)
        x = jax.random.normal(kx, (B, C, H, W), jnp.float32)
        noise = jax.random.normal(kn, (B, N_DIM), jnp.float32)
        c = jax.random.randint(kc, (B,), 0, N_CLASSES)
        u = jax.random.uniform(ku, (B,), jnp.float32,
                               minval=1e-6, maxval=1.0 - 1e-6)
        scale, shift = fwd(x, noise, c, u, params)
        jax.block_until_ready((scale, shift))
        assert scale.shape == (B, C, H, W) and shift.shape == (B, C, H, W)
        s_ref, b_ref = color_augmentation_reference(x, noise, c, u, params)
        err = max(float(jnp.max(jnp.abs(scale - s_ref))),
                  float(jnp.max(jnp.abs(shift - b_ref))))
        assert err < 2e-2, f"max abs err {err} for shape {shape}"

    run_case((2, N_CHANNEL, 16, 16), 1)   # HW=256: lane-aligned, single tile
    run_case((2, N_CHANNEL, 9, 9), 2)     # HW=81: padded + masked stats path
    print("KERNEL_OK")
</pallas_src>

<mosaic_0001>
module attributes {stable_mosaic.version = 11 : i64} {
  func.func @kernel(%arg0: i32, %arg1: i32, %arg2: memref<1x3x256xf32, #tpu.memory_space<vmem>>, %arg3: memref<1x128x1xf32, #tpu.memory_space<vmem>>, %arg4: memref<128x3xf32, #tpu.memory_space<vmem>>, %arg5: memref<1x128x1xf32, #tpu.memory_space<vmem>>, %arg6: memref<1x128x128xf32, #tpu.memory_space<vmem>>) attributes {dimension_semantics = [#tpu.dimension_semantics<parallel>, #tpu.dimension_semantics<arbitrary>], iteration_bounds = array<i64: 2, 1>, scalar_prefetch = 0 : i64, scratch_operands = 0 : i64, tpu.core_type = #tpu.core_type<tc>, window_params = [{transform_indices = @transform_0, window_bounds = array<i64: 1, 3, 256>}, {transform_indices = @transform_1, window_bounds = array<i64: 1, 128, 1>}, {pipeline_mode = #tpu.pipeline_mode<synchronous>, transform_indices = @transform_2, window_bounds = array<i64: 128, 3>}, {transform_indices = @transform_3, window_bounds = array<i64: 1, 128, 1>}, {transform_indices = @transform_4, window_bounds = array<i64: 1, 128, 128>}]} {
    %c0_i32 = arith.constant 0 : i32
    %0 = arith.cmpi eq, %arg1, %c0_i32 : i32
    %1 = arith.extui %0 : i1 to i32
    %c0_i32_0 = arith.constant 0 : i32
    %2 = arith.cmpi ne, %1, %c0_i32_0 : i32
    scf.if %2 {
      %cst_24 = arith.constant 0.000000e+00 : f32
      %32 = vector.broadcast %cst_24 : f32 to vector<1x128x1xf32>
      %c0_25 = arith.constant 0 : index
      %c0_26 = arith.constant 0 : index
      %c0_27 = arith.constant 0 : index
      %33 = vector.load %arg5[%c0_25, %c0_26, %c0_27] : memref<1x128x1xf32, #tpu.memory_space<vmem>>, vector<1x128x1xf32>
      tpu.vector_store %arg5[%c0_25, %c0_26, %c0_27], %32 {strides = array<i32>} : memref<1x128x1xf32, #tpu.memory_space<vmem>>, vector<1x128x1xf32>,
      %cst_28 = arith.constant 0.000000e+00 : f32
      %34 = vector.broadcast %cst_28 : f32 to vector<1x128x128xf32>
      %c0_29 = arith.constant 0 : index
      %c0_30 = arith.constant 0 : index
      %c0_31 = arith.constant 0 : index
      %35 = vector.load %arg6[%c0_29, %c0_30, %c0_31] : memref<1x128x128xf32, #tpu.memory_space<vmem>>, vector<1x128x128xf32>
      tpu.vector_store %arg6[%c0_29, %c0_30, %c0_31], %34 {strides = array<i32>} : memref<1x128x128xf32, #tpu.memory_space<vmem>>, vector<1x128x128xf32>,
    } else {
    }
    %c0 = arith.constant 0 : index
    %c0_1 = arith.constant 0 : index
    %3 = vector.load %arg4[%c0, %c0_1] : memref<128x3xf32, #tpu.memory_space<vmem>>, vector<128x3xf32>
    %c0_2 = arith.constant 0 : index
    %c0_3 = arith.constant 0 : index
    %c0_4 = arith.constant 0 : index
    %4 = vector.load %arg2[%c0_2, %c0_3, %c0_4] : memref<1x3x256xf32, #tpu.memory_space<vmem>>, vector<1x3x256xf32>
    %5 = vector.shape_cast %4 : vector<1x3x256xf32> to vector<3x256xf32>
    %cst = arith.constant dense<0.000000e+00> : vector<128x256xf32>
    %6 = tpu.matmul %3, %5, %cst {dimension_numbers = #tpu.dot_dimension_numbers<[1], [0], [0], [1], [0, 0, 1, 1], [], []>} : vector<128x3xf32>, vector<3x256xf32>, vector<128x256xf32> -> vector<128x256xf32>
    %c0_5 = arith.constant 0 : index
    %c0_6 = arith.constant 0 : index
    %c0_7 = arith.constant 0 : index
    %7 = vector.load %arg3[%c0_5, %c0_6, %c0_7] : memref<1x128x1xf32, #tpu.memory_space<vmem>>, vector<1x128x1xf32>
    %8 = vector.shape_cast %7 : vector<1x128x1xf32> to vector<128x1xf32>
    %9 = vector.broadcast %8 : vector<128x1xf32> to vector<128x256xf32>
    %10 = arith.addf %6, %9 : vector<128x256xf32>
    %cst_8 = arith.constant 0.000000e+00 : f32
    %11 = vector.broadcast %cst_8 : f32 to vector<128x256xf32>
    %12 = arith.cmpf oge, %10, %11 : vector<128x256xf32>
    %cst_9 = arith.constant 2.000000e-01 : f32
    %13 = vector.broadcast %cst_9 : f32 to vector<128x256xf32>
    %14 = arith.mulf %13, %10 : vector<128x256xf32>
    %15 = arith.select %12, %10, %14 : vector<128x256xi1>, vector<128x256xf32>
    %16 = arith.truncf %15 : vector<128x256xf32> to vector<128x256xbf16>
    %c0_10 = arith.constant 0 : index
    %c0_11 = arith.constant 0 : index
    %c0_12 = arith.constant 0 : index
    %17 = vector.load %arg5[%c0_10, %c0_11, %c0_12] : memref<1x128x1xf32, #tpu.memory_space<vmem>>, vector<1x128x1xf32>
    %18 = vector.shape_cast %17 : vector<1x128x1xf32> to vector<128x1xf32>
    %cst_13 = arith.constant dense<0.000000e+00> : vector<128xf32>
    %19 = vector.multi_reduction <add>, %15, %cst_13 [1] : vector<128x256xf32> to vector<128xf32>
    %20 = vector.shape_cast %19 : vector<128xf32> to vector<128x1xf32>
    %21 = arith.addf %18, %20 : vector<128x1xf32>
    %c0_14 = arith.constant 0 : index
    %c0_15 = arith.constant 0 : index
    %c0_16 = arith.constant 0 : index
    %22 = vector.load %arg5[%c0_14, %c0_15, %c0_16] : memref<1x128x1xf32, #tpu.memory_space<vmem>>, vector<1x128x1xf32>
    %23 = vector.shape_cast %22 : vector<1x128x1xf32> to vector<128x1xf32>
    %24 = vector.shape_cast %21 : vector<128x1xf32> to vector<1x128x1xf32>
    tpu.vector_store %arg5[%c0_14, %c0_15, %c0_16], %24 {strides = array<i32>} : memref<1x128x1xf32, #tpu.memory_space<vmem>>, vector<1x128x1xf32>,
    %c0_17 = arith.constant 0 : index
    %c0_18 = arith.constant 0 : index
    %c0_19 = arith.constant 0 : index
    %25 = vector.load %arg6[%c0_17, %c0_18, %c0_19] : memref<1x128x128xf32, #tpu.memory_space<vmem>>, vector<1x128x128xf32>
    %26 = vector.shape_cast %25 : vector<1x128x128xf32> to vector<128x128xf32>
    %cst_20 = arith.constant dense<0.000000e+00> : vector<128x128xf32>
    %27 = tpu.matmul %16, %16, %cst_20 {dimension_numbers = #tpu.dot_dimension_numbers<[1], [1], [0], [0], [0, 0, 1, 0], [], []>} : vector<128x256xbf16>, vector<128x256xbf16>, vector<128x128xf32> -> vector<128x128xf32>
    %28 = arith.addf %26, %27 : vector<128x128xf32>
    %c0_21 = arith.constant 0 : index
    %c0_22 = arith.constant 0 : index
    %c0_23 = arith.constant 0 : index
    %29 = vector.load %arg6[%c0_21, %c0_22, %c0_23] : memref<1x128x128xf32, #tpu.memory_space<vmem>>, vector<1x128x128xf32>
    %30 = vector.shape_cast %29 : vector<1x128x128xf32> to vector<128x128xf32>
    %31 = vector.shape_cast %28 : vector<128x128xf32> to vector<1x128x128xf32>
    tpu.vector_store %arg6[%c0_21, %c0_22, %c0_23], %31 {strides = array<i32>} : memref<1x128x128xf32, #tpu.memory_space<vmem>>, vector<1x128x128xf32>,
    return
  }
  func.func @transform_0(%arg0: i32, %arg1: i32) -> (i32, i32, i32) {
    %c0_i32 = arith.constant 0 : i32
    %c0_i32_0 = arith.constant 0 : i32
    return %arg0, %c0_i32, %arg1 : i32, i32, i32
  }
  func.func @transform_1(%arg0: i32, %arg1: i32) -> (i32, i32, i32) {
    %c0_i32 = arith.constant 0 : i32
    %c0_i32_0 = arith.constant 0 : i32
    %c0_i32_1 = arith.constant 0 : i32
    return %arg0, %c0_i32, %c0_i32_0 : i32, i32, i32
  }
  func.func @transform_2(%arg0: i32, %arg1: i32) -> (i32, i32) {
    %c0_i32 = arith.constant 0 : i32
    %c0_i32_0 = arith.constant 0 : i32
    %c0_i32_1 = arith.constant 0 : i32
    return %c0_i32, %c0_i32_0 : i32, i32
  }
  func.func @transform_3(%arg0: i32, %arg1: i32) -> (i32, i32, i32) {
    %c0_i32 = arith.constant 0 : i32
    %c0_i32_0 = arith.constant 0 : i32
    %c0_i32_1 = arith.constant 0 : i32
    return %arg0, %c0_i32, %c0_i32_0 : i32, i32, i32
  }
  func.func @transform_4(%arg0: i32, %arg1: i32) -> (i32, i32, i32) {
    %c0_i32 = arith.constant 0 : i32
    %c0_i32_0 = arith.constant 0 : i32
    %c0_i32_1 = arith.constant 0 : i32
    return %arg0, %c0_i32, %c0_i32_0 : i32, i32, i32
  }
}

module attributes {stable_mosaic.version = 11 : i64} {
  func.func @kernel(%arg0: i32, %arg1: i32, %arg2: memref<1x3x256xf32, #tpu.memory_space<vmem>>, %arg3: memref<1x128x1xf32, #tpu.memory_space<vmem>>, %arg4: memref<128x1xf32, #tpu.memory_space<vmem>>, %arg5: memref<3x2xf32, #tpu.memory_space<smem>>, %arg6: memref<128x3xf32, #tpu.memory_space<vmem>>, %arg7: memref<128x128xbf16, #tpu.memory_space<vmem>>, %arg8: memref<6x128xf32, #tpu.memory_space<vmem>>, %arg9: memref<1x3x256xf32, #tpu.memory_space<vmem>>, %arg10: memref<1x3x256xf32, #tpu.memory_space<vmem>>) attributes {dimension_semantics = [#tpu.dimension_semantics<parallel>, #tpu.dimension_semantics<parallel>], iteration_bounds = array<i64: 2, 1>, scalar_prefetch = 0 : i64, scratch_operands = 0 : i64, tpu.core_type = #tpu.core_type<tc>, window_params = [{transform_indices = @transform_0, window_bounds = array<i64: 1, 3, 256>}, {transform_indices = @transform_1, window_bounds = array<i64: 1, 128, 1>}, {pipeline_mode = #tpu.pipeline_mode<synchronous>, transform_indices = @transform_2, window_bounds = array<i64: 128, 1>}, {transform_indices = @transform_3, window_bounds = array<i64: 3, 2>}, {pipeline_mode = #tpu.pipeline_mode<synchronous>, transform_indices = @transform_4, window_bounds = array<i64: 128, 3>}, {pipeline_mode = #tpu.pipeline_mode<synchronous>, transform_indices = @transform_5, window_bounds = array<i64: 128, 128>}, {pipeline_mode = #tpu.pipeline_mode<synchronous>, transform_indices = @transform_6, window_bounds = array<i64: 6, 128>}, {transform_indices = @transform_7, window_bounds = array<i64: 1, 3, 256>}, {transform_indices = @transform_8, window_bounds = array<i64: 1, 3, 256>}]} {
    %c0 = arith.constant 0 : index
    %c0_0 = arith.constant 0 : index
    %0 = vector.load %arg6[%c0, %c0_0] : memref<128x3xf32, #tpu.memory_space<vmem>>, vector<128x3xf32>
    %c0_1 = arith.constant 0 : index
    %c0_2 = arith.constant 0 : index
    %c0_3 = arith.constant 0 : index
    %1 = vector.load %arg2[%c0_1, %c0_2, %c0_3] : memref<1x3x256xf32, #tpu.memory_space<vmem>>, vector<1x3x256xf32>
    %2 = vector.shape_cast %1 : vector<1x3x256xf32> to vector<3x256xf32>
    %cst = arith.constant dense<0.000000e+00> : vector<128x256xf32>
    %3 = tpu.matmul %0, %2, %cst {dimension_numbers = #tpu.dot_dimension_numbers<[1], [0], [0], [1], [0, 0, 1, 1], [], []>} : vector<128x3xf32>, vector<3x256xf32>, vector<128x256xf32> -> vector<128x256xf32>
    %c0_4 = arith.constant 0 : index
    %c0_5 = arith.constant 0 : index
    %c0_6 = arith.constant 0 : index
    %4 = vector.load %arg3[%c0_4, %c0_5, %c0_6] : memref<1x128x1xf32, #tpu.memory_space<vmem>>, vector<1x128x1xf32>
    %5 = vector.shape_cast %4 : vector<1x128x1xf32> to vector<128x1xf32>
    %6 = vector.broadcast %5 : vector<128x1xf32> to vector<128x256xf32>
    %7 = arith.addf %3, %6 : vector<128x256xf32>
    %cst_7 = arith.constant 0.000000e+00 : f32
    %8 = vector.broadcast %cst_7 : f32 to vector<128x256xf32>
    %9 = arith.cmpf oge, %7, %8 : vector<128x256xf32>
    %cst_8 = arith.constant 2.000000e-01 : f32
    %10 = vector.broadcast %cst_8 : f32 to vector<128x256xf32>
    %11 = arith.mulf %10, %7 : vector<128x256xf32>
    %12 = arith.select %9, %7, %11 : vector<128x256xi1>, vector<128x256xf32>
    %c0_9 = arith.constant 0 : index
    %c0_10 = arith.constant 0 : index
    %13 = vector.load %arg7[%c0_9, %c0_10] : memref<128x128xbf16, #tpu.memory_space<vmem>>, vector<128x128xbf16>
    %14 = arith.truncf %12 : vector<128x256xf32> to vector<128x256xbf16>
    %cst_11 = arith.constant dense<0.000000e+00> : vector<128x256xf32>
    %15 = tpu.matmul %13, %14, %cst_11 {dimension_numbers = #tpu.dot_dimension_numbers<[1], [0], [0], [1], [0, 0, 1, 1], [], []>} : vector<128x128xbf16>, vector<128x256xbf16>, vector<128x256xf32> -> vector<128x256xf32>
    %c0_12 = arith.constant 0 : index
    %c0_13 = arith.constant 0 : index
    %16 = vector.load %arg4[%c0_12, %c0_13] : memref<128x1xf32, #tpu.memory_space<vmem>>, vector<128x1xf32>
    %17 = vector.broadcast %16 : vector<128x1xf32> to vector<128x256xf32>
    %18 = arith.addf %15, %17 : vector<128x256xf32>
    %cst_14 = arith.constant 0.000000e+00 : f32
    %19 = vector.broadcast %cst_14 : f32 to vector<128x256xf32>
    %20 = arith.cmpf oge, %18, %19 : vector<128x256xf32>
    %cst_15 = arith.constant 2.000000e-01 : f32
    %21 = vector.broadcast %cst_15 : f32 to vector<128x256xf32>
    %22 = arith.mulf %21, %18 : vector<128x256xf32>
    %23 = arith.select %20, %18, %22 : vector<128x256xi1>, vector<128x256xf32>
    %c0_16 = arith.constant 0 : index
    %c0_17 = arith.constant 0 : index
    %24 = vector.load %arg8[%c0_16, %c0_17] : memref<6x128xf32, #tpu.memory_space<vmem>>, vector<6x128xf32>
    %cst_18 = arith.constant dense<0.000000e+00> : vector<6x256xf32>
    %25 = tpu.matmul %24, %23, %cst_18 {dimension_numbers = #tpu.dot_dimension_numbers<[1], [0], [0], [1], [0, 0, 1, 1], [], []>} : vector<6x128xf32>, vector<128x256xf32>, vector<6x256xf32> -> vector<6x256xf32>
    %c0_19 = arith.constant 0 : index
    %26 = arith.index_cast %arg0 : i32 to index
    %27 = memref.load %arg5[%c0_19, %26] : memref<3x2xf32, #tpu.memory_space<smem>>
    %c1 = arith.constant 1 : index
    %28 = arith.index_cast %arg0 : i32 to index
    %29 = memref.load %arg5[%c1, %28] : memref<3x2xf32, #tpu.memory_space<smem>>
    %c2 = arith.constant 2 : index
    %30 = arith.index_cast %arg0 : i32 to index
    %31 = memref.load %arg5[%c2, %30] : memref<3x2xf32, #tpu.memory_space<smem>>
    %32 = tpu.iota {dimensions = array<i32: 0>} : vector<6x1xi32>
    %c3_i32 = arith.constant 3 : i32
    %33 = vector.broadcast %c3_i32 : i32 to vector<6x1xi32>
    %34 = arith.cmpi slt, %32, %33 : vector<6x1xi32>
    %35 = vector.broadcast %27 : f32 to vector<6x1xf32>
    %36 = vector.broadcast %29 : f32 to vector<6x1xf32>
    %37 = arith.select %34, %35, %36 : vector<6x1xi1>, vector<6x1xf32>
    %38 = vector.broadcast %37 : vector<6x1xf32> to vector<6x256xf32>
    %39 = arith.addf %25, %38 : vector<6x256xf32>
    %cst_20 = arith.constant 0.000000e+00 : f32
    %40 = vector.broadcast %cst_20 : f32 to vector<6x256xf32>
    %41 = arith.subf %40, %39 : vector<6x256xf32>
    %42 = math.exp %41 : vector<6x256xf32>
    %cst_21 = arith.constant 1.000000e+00 : f32
    %43 = vector.broadcast %cst_21 : f32 to vector<6x256xf32>
    %44 = arith.addf %43, %42 : vector<6x256xf32>
    %cst_22 = arith.constant 1.000000e+00 : f32
    %45 = vector.broadcast %cst_22 : f32 to vector<6x256xf32>
    %46 = arith.divf %45, %44 : vector<6x256xf32>
    %cst_23 = arith.constant 5.000000e-01 : f32
    %47 = vector.broadcast %cst_23 : f32 to vector<6x256xf32>
    %48 = arith.subf %46, %47 : vector<6x256xf32>
    %49 = vector.broadcast %31 : f32 to vector<6x256xf32>
    %50 = arith.mulf %49, %48 : vector<6x256xf32>
    %51 = vector.extract_strided_slice %50 {offsets = [0, 0], sizes = [3, 256], strides = [1, 1]} : vector<6x256xf32> to vector<3x256xf32>
    %cst_24 = arith.constant 1.000000e+00 : f32
    %52 = vector.broadcast %cst_24 : f32 to vector<3x256xf32>
    %53 = arith.mulf %52, %51 : vector<3x256xf32>
    %cst_25 = arith.constant 1.000000e+00 : f32
    %54 = vector.broadcast %cst_25 : f32 to vector<3x256xf32>
    %55 = arith.addf %53, %54 : vector<3x256xf32>
    %c0_26 = arith.constant 0 : index
    %c0_27 = arith.constant 0 : index
    %c0_28 = arith.constant 0 : index
    %56 = vector.load %arg9[%c0_26, %c0_27, %c0_28] : memref<1x3x256xf32, #tpu.memory_space<vmem>>, vector<1x3x256xf32>
    %57 = vector.shape_cast %56 : vector<1x3x256xf32> to vector<3x256xf32>
    %58 = vector.shape_cast %55 : vector<3x256xf32> to vector<1x3x256xf32>
    tpu.vector_store %arg9[%c0_26, %c0_27, %c0_28], %58 {strides = array<i32>} : memref<1x3x256xf32, #tpu.memory_space<vmem>>, vector<1x3x256xf32>,
    %59 = vector.extract_strided_slice %50 {offsets = [3, 0], sizes = [3, 256], strides = [1, 1]} : vector<6x256xf32> to vector<3x256xf32>
    %c0_29 = arith.constant 0 : index
    %c0_30 = arith.constant 0 : index
    %c0_31 = arith.constant 0 : index
    %60 = vector.load %arg10[%c0_29, %c0_30, %c0_31] : memref<1x3x256xf32, #tpu.memory_space<vmem>>, vector<1x3x256xf32>
    %61 = vector.shape_cast %60 : vector<1x3x256xf32> to vector<3x256xf32>
    %62 = vector.shape_cast %59 : vector<3x256xf32> to vector<1x3x256xf32>
    tpu.vector_store %arg10[%c0_29, %c0_30, %c0_31], %62 {strides = array<i32>} : memref<1x3x256xf32, #tpu.memory_space<vmem>>, vector<1x3x256xf32>,
    return
  }
  func.func @transform_0(%arg0: i32, %arg1: i32) -> (i32, i32, i32) {
    %c0_i32 = arith.constant 0 : i32
    %c0_i32_0 = arith.constant 0 : i32
    return %arg0, %c0_i32, %arg1 : i32, i32, i32
  }
  func.func @transform_1(%arg0: i32, %arg1: i32) -> (i32, i32, i32) {
    %c0_i32 = arith.constant 0 : i32
    %c0_i32_0 = arith.constant 0 : i32
    %c0_i32_1 = arith.constant 0 : i32
    return %arg0, %c0_i32, %c0_i32_0 : i32, i32, i32
  }
  func.func @transform_2(%arg0: i32, %arg1: i32) -> (i32, i32) {
    %c0_i32 = arith.constant 0 : i32
    %c0_i32_0 = arith.constant 0 : i32
    %c0_i32_1 = arith.constant 0 : i32
    return %c0_i32, %c0_i32_0 : i32, i32
  }
  func.func @transform_3(%arg0: i32, %arg1: i32) -> (i32, i32) {
    %c0_i32 = arith.constant 0 : i32
    %c0_i32_0 = arith.constant 0 : i32
    %c0_i32_1 = arith.constant 0 : i32
    return %c0_i32, %c0_i32_0 : i32, i32
  }
  func.func @transform_4(%arg0: i32, %arg1: i32) -> (i32, i32) {
    %c0_i32 = arith.constant 0 : i32
    %c0_i32_0 = arith.constant 0 : i32
    %c0_i32_1 = arith.constant 0 : i32
    return %c0_i32, %c0_i32_0 : i32, i32
  }
  func.func @transform_5(%arg0: i32, %arg1: i32) -> (i32, i32) {
    %c0_i32 = arith.constant 0 : i32
    %c0_i32_0 = arith.constant 0 : i32
    %c0_i32_1 = arith.constant 0 : i32
    return %c0_i32, %c0_i32_0 : i32, i32
  }
  func.func @transform_6(%arg0: i32, %arg1: i32) -> (i32, i32) {
    %c0_i32 = arith.constant 0 : i32
    %c0_i32_0 = arith.constant 0 : i32
    %c0_i32_1 = arith.constant 0 : i32
    return %c0_i32, %c0_i32_0 : i32, i32
  }
  func.func @transform_7(%arg0: i32, %arg1: i32) -> (i32, i32, i32) {
    %c0_i32 = arith.constant 0 : i32
    %c0_i32_0 = arith.constant 0 : i32
    return %arg0, %c0_i32, %arg1 : i32, i32, i32
  }
  func.func @transform_8(%arg0: i32, %arg1: i32) -> (i32, i32, i32) {
    %c0_i32 = arith.constant 0 : i32
    %c0_i32_0 = arith.constant 0 : i32
    return %arg0, %c0_i32, %arg1 : i32, i32, i32
  }
}

</mosaic_0001>

<bundles_post_ra>
// kernel: color_augmentation_forward.2
= control target key start
LH: loop header
LB: loop body
LE: loop exit
PB: predicated region body
PF: predicated region fallthrough
CT: control target
= control target key end

     0   :  { %s1228_s15 = smov 0   ;;  %s1230_s16 = smov 0   ;;  %s1614_s0 = inlined_call_operand.vmem [shape: f32[2,3,256], index: 0, kind: input, shape index: {}]   ;;  %s1615_s1 = inlined_call_operand.vmem [shape: f32[2,128,1], index: 1, kind: input, shape index: {}]   ;;  %s1616_s2 = inlined_call_operand.vmem [shape: f32[128,3], index: 2, kind: input, shape index: {}]   ;;  %s1617_s3 = inlined_call_operand.vmem [shape: f32[2,128,1], index: 3, kind: output, shape index: {0}]   ;;  %s1618_s4 = inlined_call_operand.vmem [shape: f32[2,128,128], index: 4, kind: output, shape index: {1}]  }
   0x1   :  { %s1232_s17 = smov 0  }
   0x2 LB: > { %s27_s18 = sadd.s32 1, %s1195_s16  ;;  %p1099_p0 = scmp.ge.s32.totalorder %s1199_s17, 1  ;;  %s1199_s17 = sphi %s1232_s17, %s15_s17   ;;  %s1195_s16 = sphi %s1230_s16, %s1620_s16   ;;  %s1191_s15 = sphi %s1228_s15, %s1619_s15  }
   0x3   : > { %p29_p1 = scmp.ge.s32.totalorder %s27_s18, 2  ;;  %p194_p2 = scmp.lt.s32.totalorder %s1199_s17, 3 }
   0x5   : > { %s1622_s18 = smov (%p29_p1, %s27_s18), 0  ;;  %p195_p3 = pnand %p1099_p0, %p194_p2 }
   0x6   : > { %p235_p4 = scmp.lt.s32.totalorder (!%p195_p3), %s1191_s15, 1 }
   0x7   : > { %198 = sbr.rel (%p195_p3) target bundleno = 578 (0x242), region = 32 }
   0xc   : > { %v1201_v0 = vmov 0.0   ;;  %s1624_s15 = smov (!%p235_p4, %s1191_s15), 1  ;;  %v1202_v1 = vmov 0   ;;  %vm461_vm0 = vcmask 1042432   ;;  %v297_v6 = vld [vmem:[%s1616_s2] sm:$0xff]  ;;  %vm412_vm1 = vcmask 23552  }
   0xd   : > { %530 = vmatprep.mubr.f32.mxu0 %v1201_v0  ;;  %1174 = vset.pattern.permute.xlu0 %v1202_v1  ;;  %s1128_s19 = sshll.u32 %s1624_s15, 3  ;;  %s1247_s20 = sshll.u32 %s1624_s15, 7  ;;  %v298_v9 = vld [vmem:[%s1616_s2 + $0x8] sm:$0xff]  ;;  %v299_v12 = vld [vmem:[%s1616_s2 + $0x10] sm:$0xff]  ;;  %v300_v15 = vld [vmem:[%s1616_s2 + $0x18] sm:$0xff]  ;;  %vm264_vm7 = vcmask 7168  }
   0xe   : > { %1175 = vset.pattern.permute.xlu1 %v1202_v1  ;;  %s242_s23 = scalar_lea.vmem %s1614_s0, %s1128_s19  ;;  %s1256_s26 = scalar_lea.vmem %s1615_s1, %s1247_s20  ;;  %v301_v18 = vld [vmem:[%s1616_s2 + $0x20] sm:$0xff]  ;;  %v302_v21 = vld [vmem:[%s1616_s2 + $0x28] sm:$0xff]  ;;  %v303_v24 = vld [vmem:[%s1616_s2 + $0x30] sm:$0xff] }
   0xf   : > { %v313_v2 = vld [vmem:[%s242_s23] sm:$0x77]  ;;  %v328_v3 = vld [vmem:[%s1256_s26 + $0x70] sm:$0xff]  ;;  %v329_v7 = vld [vmem:[%s1256_s26 + $0x78] sm:$0xff]  ;;  %s1381_s13 = scalar_lea.vmem %s1617_s3, %s1247_s20  ;;  %s1587_s19 = scalar_lea.vmem %s1618_s4, %s1247_s20 }
  0x10   : > { %v411_v4 = vcombine.high %v313_v2, %v313_v2  ;;  %402 = vperm.xlu0 %1174, %v328_v3   ;;  %v326_v5 = vld [vmem:[%s1256_s26 + $0x60] sm:$0xff]  ;;  %v327_v8 = vld [vmem:[%s1256_s26 + $0x68] sm:$0xff]  ;;  %v324_v10 = vld [vmem:[%s1256_s26 + $0x50] sm:$0xff]  ;;  %265 = vst.msk [vmem:[%s1381_s13] sm:$0xff] %vm264_vm7, %v1201_v0 }
  0x11   : > { %392 = vperm.xlu1 %1175, %v326_v5   ;;  %v325_v11 = vld [vmem:[%s1256_s26 + $0x58] sm:$0xff]  ;;  %v322_v13 = vld [vmem:[%s1256_s26 + $0x40] sm:$0xff]  ;;  %v323_v14 = vld [vmem:[%s1256_s26 + $0x48] sm:$0xff]  ;;  %266 = vst.msk [vmem:[%s1381_s13 + $0x8] sm:$0xff] %vm264_vm7, %v1201_v0 }
  0x12   : > { %1108 = vmatprep.subr.msk.mxu0 %vm461_vm0, %v411_v4  ;;  %v320_v16 = vld [vmem:[%s1256_s26 + $0x30] sm:$0xff]  ;;  %v321_v17 = vld [vmem:[%s1256_s26 + $0x38] sm:$0xff]  ;;  %v318_v19 = vld [vmem:[%s1256_s26 + $0x20] sm:$0xff]  ;;  %267 = vst.msk [vmem:[%s1381_s13 + $0x10] sm:$0xff] %vm264_vm7, %v1201_v0 }
  0x13   : > { %1109 = vmatpush1.msk.msra.mxu0 %vm461_vm0, %v313_v2  ;;  %v319_v20 = vld [vmem:[%s1256_s26 + $0x28] sm:$0xff]  ;;  %v316_v22 = vld [vmem:[%s1256_s26 + $0x10] sm:$0xff]  ;;  %v317_v23 = vld [vmem:[%s1256_s26 + $0x18] sm:$0xff]  ;;  %268 = vst.msk [vmem:[%s1381_s13 + $0x18] sm:$0xff] %vm264_vm7, %v1201_v0 }
  0x14   : > { %1110 = vmatmul.mubr.msk.f32.vlgmr.msra.gmra.mxu0 %vm412_vm1, %v297_v6  ;;  %407 = vperm.xlu0 %1174, %v329_v7   ;;  %v314_v25 = vld [vmem:[%s1256_s26] sm:$0xff]  ;;  %v315_v26 = vld [vmem:[%s1256_s26 + $0x8] sm:$0xff]  ;;  %v304_v27 = vld [vmem:[%s1616_s2 + $0x38] sm:$0xff]  ;;  %269 = vst.msk [vmem:[%s1381_s13 + $0x20] sm:$0xff] %vm264_vm7, %v1201_v0 }
  0x15   : > { %536 = vmatprep.mubr.f32.mxu0 %v1201_v0  ;;  %397 = vperm.xlu1 %1175, %v327_v8   ;;  %v305_v28 = vld [vmem:[%s1616_s2 + $0x40] sm:$0xff]  ;;  %v306_v29 = vld [vmem:[%s1616_s2 + $0x48] sm:$0xff]  ;;  %v307_v30 = vld [vmem:[%s1616_s2 + $0x50] sm:$0xff]  ;;  %270 = vst.msk [vmem:[%s1381_s13 + $0x28] sm:$0xff] %vm264_vm7, %v1201_v0 }
  0x16   : > { %v308_v31 = vld [vmem:[%s1616_s2 + $0x58] sm:$0xff]  ;;  %v309_v32 = vld [vmem:[%s1616_s2 + $0x60] sm:$0xff]  ;;  %v310_v33 = vld [vmem:[%s1616_s2 + $0x68] sm:$0xff]  ;;  %271 = vst.msk [vmem:[%s1381_s13 + $0x30] sm:$0xff] %vm264_vm7, %v1201_v0 }
  0x17   : > { %v311_v34 = vld [vmem:[%s1616_s2 + $0x70] sm:$0xff]  ;;  %v312_v35 = vld [vmem:[%s1616_s2 + $0x78] sm:$0xff]  ;;  %272 = vst.msk [vmem:[%s1381_s13 + $0x38] sm:$0xff] %vm264_vm7, %v1201_v0  ;;  %273 = vst.msk [vmem:[%s1381_s13 + $0x40] sm:$0xff] %vm264_vm7, %v1201_v0 }
  0x18   : > { %1111 = vmatmul.mubr.msk.f32.gmra.mxu0 %vm412_vm1, %v298_v9  ;;  %382 = vperm.xlu0 %1174, %v324_v10   ;;  %274 = vst.msk [vmem:[%s1381_s13 + $0x48] sm:$0xff] %vm264_vm7, %v1201_v0  ;;  %275 = vst.msk [vmem:[%s1381_s13 + $0x50] sm:$0xff] %vm264_vm7, %v1201_v0 }
  0x19   : > { %542 = vmatprep.mubr.f32.mxu0 %v1201_v0  ;;  %387 = vperm.xlu1 %1175, %v325_v11   ;;  %276 = vst.msk [vmem:[%s1381_s13 + $0x58] sm:$0xff] %vm264_vm7, %v1201_v0  ;;  %277 = vst.msk [vmem:[%s1381_s13 + $0x60] sm:$0xff] %vm264_vm7, %v1201_v0 }
  0x1a   : > { %278 = vst.msk [vmem:[%s1381_s13 + $0x68] sm:$0xff] %vm264_vm7, %v1201_v0  ;;  %279 = vst.msk [vmem:[%s1381_s13 + $0x70] sm:$0xff] %vm264_vm7, %v1201_v0 }
  0x1b   : > { %280 = vst.msk [vmem:[%s1381_s13 + $0x78] sm:$0xff] %vm264_vm7, %v1201_v0 }
  0x1c   : > { %1112 = vmatmul.mubr.msk.f32.gmra.mxu0 %vm412_vm1, %v299_v12  ;;  %372 = vperm.xlu0 %1174, %v322_v13  }
  0x1d   : > { %548 = vmatprep.mubr.f32.mxu0 %v1201_v0  ;;  %377 = vperm.xlu1 %1175, %v323_v14  }
  0x20   : > { %1113 = vmatmul.mubr.msk.f32.gmra.mxu0 %vm412_vm1, %v300_v15  ;;  %362 = vperm.xlu0 %1174, %v320_v16  }
  0x21   : > { %554 = vmatprep.mubr.f32.mxu0 %v1201_v0  ;;  %367 = vperm.xlu1 %1175, %v321_v17  }
  0x24   : > { %1114 = vmatmul.mubr.msk.f32.gmra.mxu0 %vm412_vm1, %v301_v18  ;;  %352 = vperm.xlu0 %1174, %v318_v19  }
  0x25   : > { %560 = vmatprep.mubr.f32.mxu0 %v1201_v0  ;;  %357 = vperm.xlu1 %1175, %v319_v20  }
  0x28   : > { %1115 = vmatmul.mubr.msk.f32.gmra.mxu0 %vm412_vm1, %v302_v21  ;;  %342 = vperm.xlu0 %1174, %v316_v22  }
  0x29   : > { %566 = vmatprep.mubr.f32.mxu0 %v1201_v0  ;;  %347 = vperm.xlu1 %1175, %v317_v23  }
  0x2c   : > { %1116 = vmatmul.mubr.msk.f32.gmra.mxu0 %vm412_vm1, %v303_v24  ;;  %332 = vperm.xlu0 %1174, %v314_v25  }
  0x2d   : > { %572 = vmatprep.mubr.f32.mxu0 %v1201_v0  ;;  %337 = vperm.xlu1 %1175, %v315_v26  }
  0x30   : > { %1117 = vmatmul.mubr.msk.f32.gmra.mxu0 %vm412_vm1, %v304_v27 }
  0x31   : > { %578 = vmatprep.mubr.f32.mxu0 %v1201_v0 }
  0x34   : > { %1118 = vmatmul.mubr.msk.f32.gmra.mxu0 %vm412_vm1, %v305_v28 }
  0x35   : > { %584 = vmatprep.mubr.f32.mxu0 %v1201_v0 }
  0x38   : > { %1119 = vmatmul.mubr.msk.f32.gmra.mxu0 %vm412_vm1, %v306_v29 }
  0x39   : > { %590 = vmatprep.mubr.f32.mxu0 %v1201_v0 }
  0x3c   : > { %1120 = vmatmul.mubr.msk.f32.gmra.mxu0 %vm412_vm1, %v307_v30 }
  0x3d   : > { %596 = vmatprep.mubr.f32.mxu0 %v1201_v0 }
  0x40   : > { %1121 = vmatmul.mubr.msk.f32.gmra.mxu0 %vm412_vm1, %v308_v31 }
  0x41   : > { %602 = vmatprep.mubr.f32.mxu0 %v1201_v0 }
  0x44   : > { %1122 = vmatmul.mubr.msk.f32.gmra.mxu0 %vm412_vm1, %v309_v32 }
  0x45   : > { %608 = vmatprep.mubr.f32.mxu0 %v1201_v0 }
  0x48   : > { %1123 = vmatmul.mubr.msk.f32.gmra.mxu0 %vm412_vm1, %v310_v33 }
  0x49   : > { %614 = vmatprep.mubr.f32.mxu0 %v1201_v0 }
  0x4c   : > { %1124 = vmatmul.mubr.msk.f32.gmra.mxu0 %vm412_vm1, %v311_v34 }
  0x4d   : > { %620 = vmatprep.mubr.f32.mxu0 %v1201_v0 }
  0x50   : > { %1125 = vmatmul.mubr.msk.f32.gmra.mxu0 %vm412_vm1, %v312_v35 }
  0x8b   : > { %v1353_v36 = vpop.permute.xlu0 %402 }
  0x8c   : > { %v1355_v37 = vpop.permute.xlu1 %392 }
  0x8f   : > { %v1357_v38 = vpop.permute.xlu0 %407 }
  0x90   : > { %v1359_v39 = vpop.permute.xlu1 %397 }
  0x93   : > { %v1361_v40 = vpop.permute.xlu0 %382 }
  0x94   : > { %v1363_v41 = vpop.permute.xlu1 %387 }
  0x97   : > { %v1365_v42 = vpop.permute.xlu0 %372 }
  0x98   : > { %v1367_v43 = vpop.permute.xlu1 %377 }
  0x9b   : > { %v1369_v44 = vpop.permute.xlu0 %362 }
  0x9c   : > { %v1371_v45 = vpop.permute.xlu1 %367 }
  0x9f   : > { %v1373_v46 = vpop.permute.xlu0 %352 }
  0xa0   : > { %v1375_v47 = vpop.permute.xlu1 %357 }
  0xa3   : > { %v343_v48 = vpop.permute.xlu0 %342 }
  0xa4   : > { %v348_v49 = vpop.permute.xlu1 %347 }
  0xa7   : > { %v333_v50 = vpop.permute.xlu0 %332 }
  0xa8   : > { %v338_v54 = vpop.permute.xlu1 %337 }
  0xd4   : > { %v532_v51 = vpop.f32.mrf.mxu0 }
  0xd5   : > { %v533_v52 = vadd.f32 %v532_v51, %v333_v50 }
  0xd6   : > { %v534_v53 = vpop.f32.mrf.mxu0 }
  0xd7   : > { %v659_v55 = vmul.f32 0.2, %v533_v52  ;;  %v535_v56 = vadd.f32 %v534_v53, %v333_v50  ;;  %vm627_vm2 = vcmp.ge.f32.partialorder %v533_v52, 0.0 }
  0xd8   : > { %v538_v57 = vpop.f32.mrf.mxu0 }
  0xd9   : > { %v660_v58 = vmul.f32 0.2, %v535_v56  ;;  %v539_v59 = vadd.f32 %v538_v57, %v338_v54  ;;  %vm628_vm3 = vcmp.ge.f32.partialorder %v535_v56, 0.0  ;;  %v691_v61 = vsel %vm627_vm2, %v533_v52, %v659_v55 }
  0xda   : > { %v540_v60 = vpop.f32.mrf.mxu0 }
  0xdb   : > { %v661_v62 = vmul.f32 0.2, %v539_v59  ;;  %v541_v63 = vadd.f32 %v540_v60, %v338_v54  ;;  %v692_v1 = vsel %vm628_vm3, %v535_v56, %v660_v58  ;;  %vm629_vm4 = vcmp.ge.f32.partialorder %v539_v59, 0.0 }
  0xdc   : > { %v544_v2 = vpop.f32.mrf.mxu0  ;;  %v755_v3 = vadd.f32 %v692_v1, %v691_v61 }
  0xdd   : > { %v662_v4 = vmul.f32 0.2, %v541_v63  ;;  %v545_v5 = vadd.f32 %v544_v2, %v343_v48  ;;  %vm630_vm5 = vcmp.ge.f32.partialorder %v541_v63, 0.0  ;;  %v693_v6 = vsel %vm629_vm4, %v539_v59, %v661_v62 }
  0xde   : > { %v546_v7 = vpop.f32.mrf.mxu0  ;;  %756 = vadd.xlane.f32.xlu0 %v755_v3  ;;  %v1383_v8 = vpack.c.bf16 %v693_v6, %v691_v61 }
  0xdf   : > { %v663_v9 = vmul.f32 0.2, %v545_v5  ;;  %v547_v10 = vadd.f32 %v546_v7, %v343_v48  ;;  %v694_v11 = vsel %vm630_vm5, %v541_v63, %v662_v4  ;;  %vm631_vm6 = vcmp.ge.f32.partialorder %v545_v5, 0.0 }
  0xe0   : > { %v550_v12 = vpop.f32.mrf.mxu0  ;;  %v758_v13 = vadd.f32 %v694_v11, %v693_v6  ;;  %v1385_v14 = vpack.c.bf16 %v694_v11, %v692_v1 }
  0xe1   : > { %v664_v15 = vmul.f32 0.2, %v547_v10  ;;  %v551_v16 = vadd.f32 %v550_v12, %v348_v49  ;;  %vm632_vm8 = vcmp.ge.f32.partialorder %v547_v10, 0.0  ;;  %v695_v18 = vsel %vm631_vm6, %v545_v5, %v663_v9 }
  0xe2   : > { %v552_v17 = vpop.f32.mrf.mxu0  ;;  %759 = vadd.xlane.f32.xlu1 %v758_v13  ;;  %884 = vmatprep.mubr.bf16.mxu0 %v1385_v14 }
  0xe3   : > { %v665_v19 = vmul.f32 0.2, %v551_v16  ;;  %v553_v20 = vadd.f32 %v552_v17, %v348_v49  ;;  %v696_v21 = vsel %vm632_vm8, %v547_v10, %v664_v15  ;;  %vm633_vm9 = vcmp.ge.f32.partialorder %v551_v16, 0.0 }
  0xe4   : > { %v556_v22 = vpop.f32.mrf.mxu0  ;;  %v761_v23 = vadd.f32 %v696_v21, %v695_v18 }
  0xe5   : > { %v666_v24 = vmul.f32 0.2, %v553_v20  ;;  %v557_v25 = vadd.f32 %v556_v22, %v1373_v46  ;;  %vm634_vm10 = vcmp.ge.f32.partialorder %v553_v20, 0.0  ;;  %v697_v26 = vsel %vm633_vm9, %v551_v16, %v665_v19 }
  0xe6   : > { %v558_v27 = vpop.f32.mrf.mxu0  ;;  %762 = vadd.xlane.f32.xlu0 %v761_v23  ;;  %v1439_v0 = vpack.c.bf16 %v697_v26, %v695_v18 }
  0xe7   : > { %v667_v28 = vmul.f32 0.2, %v557_v25  ;;  %v559_v29 = vadd.f32 %v558_v27, %v1373_v46  ;;  %v698_v30 = vsel %vm634_vm10, %v553_v20, %v666_v24  ;;  %vm635_vm11 = vcmp.ge.f32.partialorder %v557_v25, 0.0 }
  0xe8   : > { %v562_v31 = vpop.f32.mrf.mxu0  ;;  %v1442_v32 = vpack.c.bf16 %v698_v30, %v696_v21  ;;  %v764_v33 = vadd.f32 %v698_v30, %v697_v26 }
  0xe9   : > { %v668_v34 = vmul.f32 0.2, %v559_v29  ;;  %v563_v35 = vadd.f32 %v562_v31, %v1375_v47  ;;  %vm636_vm12 = vcmp.ge.f32.partialorder %v559_v29, 0.0  ;;  %v699_v49 = vsel %vm635_vm11, %v557_v25, %v667_v28 }
  0xea   : > { %v564_v48 = vpop.f32.mrf.mxu0  ;;  %765 = vadd.xlane.f32.xlu0 %v764_v33 }
  0xeb   : > { %v669_v50 = vmul.f32 0.2, %v563_v35  ;;  %v565_v51 = vadd.f32 %v564_v48, %v1375_v47  ;;  %v700_v52 = vsel %vm636_vm12, %v559_v29, %v668_v34  ;;  %vm637_vm13 = vcmp.ge.f32.partialorder %v563_v35, 0.0 }
  0xec   : > { %v568_v53 = vpop.f32.mrf.mxu0  ;;  %v767_v46 = vadd.f32 %v700_v52, %v699_v49 }
  0xed   : > { %v670_v54 = vmul.f32 0.2, %v565_v51  ;;  %v569_v55 = vadd.f32 %v568_v53, %v1369_v44  ;;  %vm638_vm14 = vcmp.ge.f32.partialorder %v565_v51, 0.0  ;;  %v701_v56 = vsel %vm637_vm13, %v563_v35, %v669_v50 }
  0xee   : > { %v570_v57 = vpop.f32.mrf.mxu0  ;;  %768 = vadd.xlane.f32.xlu1 %v767_v46  ;;  %v1447_v58 = vpack.c.bf16 %v701_v56, %v699_v49 }
  0xef   : > { %v671_v59 = vmul.f32 0.2, %v569_v55  ;;  %v571_v60 = vadd.f32 %v570_v57, %v1369_v44  ;;  %v702_v61 = vsel %vm638_vm14, %v565_v51, %v670_v54  ;;  %vm639_vm15 = vcmp.ge.f32.partialorder %v569_v55, 0.0 }
  0xf0   : > { %v574_v62 = vpop.f32.mrf.mxu0  ;;  %v1450_v47 = vpack.c.bf16 %v702_v61, %v700_v52  ;;  %v770_v63 = vadd.f32 %v702_v61, %v701_v56 }
  0xf1   : > { %v672_v1 = vmul.f32 0.2, %v571_v60  ;;  %v575_v2 = vadd.f32 %v574_v62, %v1371_v45  ;;  %vm640_vm0 = vcmp.ge.f32.partialorder %v571_v60, 0.0  ;;  %v703_v4 = vsel %vm639_vm15, %v569_v55, %v671_v59 }
  0xf2   : > { %v576_v3 = vpop.f32.mrf.mxu0  ;;  %771 = vadd.xlane.f32.xlu0 %v770_v63 }
  0xf3   : > { %v673_v5 = vmul.f32 0.2, %v575_v2  ;;  %v577_v6 = vadd.f32 %v576_v3, %v1371_v45  ;;  %v704_v7 = vsel %vm640_vm0, %v571_v60, %v672_v1  ;;  %vm641_vm1 = vcmp.ge.f32.partialorder %v575_v2, 0.0 }
  0xf4   : > { %v580_v9 = vpop.f32.mrf.mxu0  ;;  %v773_v44 = vadd.f32 %v704_v7, %v703_v4 }
  0xf5   : > { %vm642_vm2 = vcmp.ge.f32.partialorder %v577_v6, 0.0  ;;  %v674_v10 = vmul.f32 0.2, %v577_v6  ;;  %v581_v11 = vadd.f32 %v580_v9, %v1365_v42  ;;  %v705_v12 = vsel %vm641_vm1, %v575_v2, %v673_v5 }
  0xf6   : > { %v582_v13 = vpop.f32.mrf.mxu0  ;;  %774 = vadd.xlane.f32.xlu1 %v773_v44  ;;  %v1455_v15 = vpack.c.bf16 %v705_v12, %v703_v4 }
  0xf7   : > { %v675_v16 = vmul.f32 0.2, %v581_v11  ;;  %v583_v17 = vadd.f32 %v582_v13, %v1365_v42  ;;  %v706_v18 = vsel %vm642_vm2, %v577_v6, %v674_v10  ;;  %vm643_vm3 = vcmp.ge.f32.partialorder %v581_v11, 0.0 }
  0xf8   : > { %v1458_v19 = vpack.c.bf16 %v706_v18, %v704_v7  ;;  %v586_v45 = vpop.f32.mrf.mxu0  ;;  %v776_v20 = vadd.f32 %v706_v18, %v705_v12 }
  0xf9   : > { %v676_v21 = vmul.f32 0.2, %v583_v17  ;;  %v587_v22 = vadd.f32 %v586_v45, %v1367_v43  ;;  %vm644_vm4 = vcmp.ge.f32.partialorder %v583_v17, 0.0  ;;  %v1462_v24 = vsel %vm643_vm3, %v581_v11, %v675_v16 }
  0xfa   : > { %v588_v23 = vpop.f32.mrf.mxu0  ;;  %908 = vmatprep.mubr.bf16.mxu1 %v1458_v19  ;;  %777 = vadd.xlane.f32.xlu0 %v776_v20 }
  0xfb   : > { %v677_v25 = vmul.f32 0.2, %v587_v22  ;;  %v589_v26 = vadd.f32 %v588_v23, %v1367_v43  ;;  %v1465_v42 = vsel %vm644_vm4, %v583_v17, %v676_v21  ;;  %vm645_vm5 = vcmp.ge.f32.partialorder %v587_v22, 0.0 }
  0xfc   : > { %v592_v27 = vpop.f32.mrf.mxu0  ;;  %v779_v28 = vadd.f32 %v1465_v42, %v1462_v24 }
  0xfd   : > { %v678_v29 = vmul.f32 0.2, %v589_v26  ;;  %v593_v30 = vadd.f32 %v592_v27, %v1361_v40  ;;  %vm646_vm6 = vcmp.ge.f32.partialorder %v589_v26, 0.0  ;;  %v1470_v33 = vsel %vm645_vm5, %v587_v22, %v677_v25 }
  0xfe   : > { %v594_v31 = vpop.f32.mrf.mxu0  ;;  %780 = vadd.xlane.f32.xlu1 %v779_v28 }
  0xff   : > { %v679_v34 = vmul.f32 0.2, %v593_v30  ;;  %v595_v35 = vadd.f32 %v594_v31, %v1361_v40  ;;  %v1473_v48 = vsel %vm646_vm6, %v589_v26, %v678_v29  ;;  %vm647_vm8 = vcmp.ge.f32.partialorder %v593_v30, 0.0 }
 0x100   : > { %v598_v43 = vpop.f32.mrf.mxu0  ;;  %v782_v49 = vadd.f32 %v1473_v48, %v1470_v33 }
 0x101   : > { %v680_v50 = vmul.f32 0.2, %v595_v35  ;;  %v599_v51 = vadd.f32 %v598_v43, %v1363_v41  ;;  %vm648_vm9 = vcmp.ge.f32.partialorder %v595_v35, 0.0  ;;  %v1478_v53 = vsel %vm647_vm8, %v593_v30, %v679_v34 }
 0x102   : > { %v600_v52 = vpop.f32.mrf.mxu0  ;;  %783 = vadd.xlane.f32.xlu0 %v782_v49 }
 0x103   : > { %v681_v46 = vmul.f32 0.2, %v599_v51  ;;  %v601_v54 = vadd.f32 %v600_v52, %v1363_v41  ;;  %v1481_v55 = vsel %vm648_vm9, %v595_v35, %v680_v50  ;;  %vm649_vm10 = vcmp.ge.f32.partialorder %v599_v51, 0.0 }
 0x104   : > { %v604_v40 = vpop.f32.mrf.mxu0  ;;  %v785_v56 = vadd.f32 %v1481_v55, %v1478_v53  ;;  %v732_v52 = vpack.c.bf16 %v1473_v48, %v1465_v42  ;;  %v740_v42 = vld [vmem:[%s1381_s13 + $0x8] sm:$0xff] }
 0x105   : > { %v682_v57 = vmul.f32 0.2, %v601_v54  ;;  %v605_v59 = vadd.f32 %v604_v40, %v1355_v37  ;;  %vm650_vm11 = vcmp.ge.f32.partialorder %v601_v54, 0.0  ;;  %v1486_v61 = vsel %vm649_vm10, %v599_v51, %v681_v46  ;;  %v744_v40 = vld [vmem:[%s1381_s13 + $0x28] sm:$0xff] }
 0x106   : > { %v606_v60 = vpop.f32.mrf.mxu0  ;;  %786 = vadd.xlane.f32.xlu1 %v785_v56  ;;  %v733_v51 = vpack.c.bf16 %v1486_v61, %v1478_v53  ;;  %v731_v46 = vpack.c.bf16 %v1470_v33, %v1462_v24  ;;  %v742_v33 = vld [vmem:[%s1381_s13 + $0x18] sm:$0xff]  ;;  %v743_v53 = vld [vmem:[%s1381_s13 + $0x20] sm:$0xff] }
 0x107   : > { %v683_v62 = vmul.f32 0.2, %v605_v59  ;;  %v607_v63 = vadd.f32 %v606_v60, %v1355_v37  ;;  %v714_v1 = vsel %vm650_vm11, %v601_v54, %v682_v57  ;;  %vm651_vm12 = vcmp.ge.f32.partialorder %v605_v59, 0.0 }
 0x108   : > { %v610_v41 = vpop.f32.mrf.mxu0  ;;  %v788_v2 = vadd.f32 %v714_v1, %v1486_v61  ;;  %v734_v50 = vpack.c.bf16 %v714_v1, %v1481_v55 }
 0x109   : > { %v684_v3 = vmul.f32 0.2, %v607_v63  ;;  %v611_v4 = vadd.f32 %v610_v41, %v1359_v39  ;;  %vm652_vm13 = vcmp.ge.f32.partialorder %v607_v63, 0.0  ;;  %v715_v6 = vsel %vm651_vm12, %v605_v59, %v683_v62  ;;  %v745_v59 = vld [vmem:[%s1381_s13 + $0x30] sm:$0xff]  ;;  %v746_v62 = vld [vmem:[%s1381_s13 + $0x38] sm:$0xff]  ;;  %v747_v41 = vld [vmem:[%s1381_s13 + $0x40] sm:$0xff] }
 0x10a   : > { %v612_v5 = vpop.f32.mrf.mxu0  ;;  %789 = vadd.xlane.f32.xlu0 %v788_v2 }
 0x10b   : > { %v685_v7 = vmul.f32 0.2, %v611_v4  ;;  %v613_v9 = vadd.f32 %v612_v5, %v1359_v39  ;;  %v716_v44 = vsel %vm652_vm13, %v607_v63, %v684_v3  ;;  %vm653_vm14 = vcmp.ge.f32.partialorder %v611_v4, 0.0 }
 0x10c   : > { %v616_v10 = vpop.f32.mrf.mxu0  ;;  %v791_v11 = vadd.f32 %v716_v44, %v715_v6 }
 0x10d   : > { %v686_v37 = vmul.f32 0.2, %v613_v9  ;;  %v617_v12 = vadd.f32 %v616_v10, %v1353_v36  ;;  %vm654_vm15 = vcmp.ge.f32.partialorder %v613_v9, 0.0  ;;  %v717_v16 = vsel %vm653_vm14, %v611_v4, %v685_v7  ;;  %v748_v4 = vld [vmem:[%s1381_s13 + $0x48] sm:$0xff]  ;;  %v749_v7 = vld [vmem:[%s1381_s13 + $0x50] sm:$0xff]  ;;  %v750_v10 = vld [vmem:[%s1381_s13 + $0x58] sm:$0xff] }
 0x10e   : > { %v618_v13 = vpop.f32.mrf.mxu0  ;;  %792 = vadd.xlane.f32.xlu1 %v791_v11 }
 0x10f   : > { %v687_v17 = vmul.f32 0.2, %v617_v12  ;;  %v619_v18 = vadd.f32 %v618_v13, %v1353_v36  ;;  %v718_v45 = vsel %vm654_vm15, %v613_v9, %v686_v37  ;;  %vm655_vm0 = vcmp.ge.f32.partialorder %v617_v12, 0.0 }
 0x110   : > { %v622_v20 = vpop.f32.mrf.mxu0  ;;  %v794_v21 = vadd.f32 %v718_v45, %v717_v16  ;;  %v736_v49 = vpack.c.bf16 %v718_v45, %v716_v44 }
 0x111   : > { %v688_v22 = vmul.f32 0.2, %v619_v18  ;;  %v623_v39 = vadd.f32 %v622_v20, %v1357_v38  ;;  %vm656_vm1 = vcmp.ge.f32.partialorder %v619_v18, 0.0  ;;  %v719_v25 = vsel %vm655_vm0, %v617_v12, %v687_v17  ;;  %v751_v12 = vld [vmem:[%s1381_s13 + $0x60] sm:$0xff]  ;;  %v752_v17 = vld [vmem:[%s1381_s13 + $0x68] sm:$0xff]  ;;  %v753_v20 = vld [vmem:[%s1381_s13 + $0x70] sm:$0xff] }
 0x112   : > { %v624_v23 = vpop.f32.mrf.mxu0  ;;  %795 = vadd.xlane.f32.xlu0 %v794_v21 }
 0x113   : > { %v689_v26 = vmul.f32 0.2, %v623_v39  ;;  %v625_v27 = vadd.f32 %v624_v23, %v1357_v38  ;;  %v720_v28 = vsel %vm656_vm1, %v619_v18, %v688_v22  ;;  %vm657_vm2 = vcmp.ge.f32.partialorder %v623_v39, 0.0 }
 0x114   : > { %v797_v29 = vadd.f32 %v720_v28, %v719_v25  ;;  %v735_v38 = vpack.c.bf16 %v717_v16, %v715_v6 }
 0x115   : > { %vm658_vm3 = vcmp.ge.f32.partialorder %v625_v27, 0.0  ;;  %v690_v30 = vmul.f32 0.2, %v625_v27  ;;  %v721_v36 = vsel %vm657_vm2, %v623_v39, %v689_v26  ;;  %v754_v39 = vld [vmem:[%s1381_s13 + $0x78] sm:$0xff] }
 0x116   : > { %798 = vadd.xlane.f32.xlu1 %v797_v29  ;;  %v1498_v43 = vpack.c.bf16 %v721_v36, %v719_v25 }
 0x117   : > { %v722_v31 = vsel %vm658_vm3, %v625_v27, %v690_v30 }
 0x118   : > { %v1496_v34 = vpack.c.bf16 %v722_v31, %v720_v28  ;;  %v800_v35 = vadd.f32 %v722_v31, %v721_v36 }
 0x11a   : > { %852 = vmatprep.subr.bf16.mxu0 %v1496_v34  ;;  %1132 = vmatprep.subr.bf16.mxu1 %v1496_v34 }
 0x11b   : > { %801 = vadd.xlane.f32.xlu0 %v800_v35  ;;  %853 = vmatpush1.bf16.xpose.msra.mxu0 %v1498_v43 }
 0x11c   : > { %1140 = vmatpush1.bf16.xpose.msra.mxu1 %v1498_v43  ;;  %854 = vmatprep.subr.bf16.mxu0 %v736_v49 }
 0x11d   : > { %1133 = vmatprep.subr.bf16.mxu1 %v736_v49 }
 0x123   : > { %855 = vmatpush1.bf16.xpose.msra.mxu0 %v735_v38 }
 0x124   : > { %1141 = vmatpush1.bf16.xpose.msra.mxu1 %v735_v38  ;;  %856 = vmatprep.subr.bf16.mxu0 %v734_v50 }
 0x125   : > { %1134 = vmatprep.subr.bf16.mxu1 %v734_v50 }
 0x12b   : > { %857 = vmatpush1.bf16.xpose.msra.mxu0 %v733_v51 }
 0x12c   : > { %1142 = vmatpush1.bf16.xpose.msra.mxu1 %v733_v51  ;;  %858 = vmatprep.subr.bf16.mxu0 %v732_v52 }
 0x12d   : > { %1135 = vmatprep.subr.bf16.mxu1 %v732_v52 }
 0x133   : > { %859 = vmatpush1.bf16.xpose.msra.mxu0 %v731_v46 }
 0x134   : > { %1143 = vmatpush1.bf16.xpose.msra.mxu1 %v731_v46  ;;  %860 = vmatprep.subr.bf16.mxu0 %v1458_v19 }
 0x135   : > { %1136 = vmatprep.subr.bf16.mxu1 %v1458_v19 }
 0x13b   : > { %861 = vmatpush1.bf16.xpose.msra.mxu0 %v1455_v15 }
 0x13c   : > { %1144 = vmatpush1.bf16.xpose.msra.mxu1 %v1455_v15  ;;  %862 = vmatprep.subr.bf16.mxu0 %v1450_v47 }
 0x13d   : > { %1137 = vmatprep.subr.bf16.mxu1 %v1450_v47 }
 0x143   : > { %863 = vmatpush1.bf16.xpose.msra.mxu0 %v1447_v58 }
 0x144   : > { %1145 = vmatpush1.bf16.xpose.msra.mxu1 %v1447_v58  ;;  %864 = vmatprep.subr.bf16.mxu0 %v1442_v32 }
 0x145   : > { %1138 = vmatprep.subr.bf16.mxu1 %v1442_v32 }
 0x14b   : > { %865 = vmatpush1.bf16.xpose.msra.mxu0 %v1439_v0 }
 0x14c   : > { %1146 = vmatpush1.bf16.xpose.msra.mxu1 %v1439_v0  ;;  %866 = vmatprep.subr.bf16.mxu0 %v1385_v14 }
 0x14d   : > { %1139 = vmatprep.subr.bf16.mxu1 %v1385_v14  ;;  %v739_v14 = vld [vmem:[%s1381_s13] sm:$0xff] }
 0x153   : > { %867 = vmatpush1.bf16.xpose.msra.mxu0 %v1383_v8 }
 0x154   : > { %1147 = vmatpush1.bf16.xpose.msra.mxu1 %v1383_v8 }
 0x15a   : > { %885 = vmatmul.mubr.bf16.vlgmr.msra.gmra.mxu0 %v1383_v8 }
 0x15b   : > { %909 = vmatmul.mubr.bf16.vlgmr.msra.gmra.mxu1 %v1455_v15  ;;  %892 = vmatprep.mubr.bf16.mxu0 %v1442_v32 }
 0x15c   : > { %916 = vmatprep.mubr.bf16.mxu1 %v732_v52 }
 0x162   : > { %893 = vmatmul.mubr.bf16.gmra.mxu0 %v1439_v0  ;;  %v741_v0 = vld [vmem:[%s1381_s13 + $0x10] sm:$0xff] }
 0x163   : > { %917 = vmatmul.mubr.bf16.gmra.mxu1 %v731_v46  ;;  %900 = vmatprep.mubr.bf16.mxu0 %v1450_v47 }
 0x164   : > { %924 = vmatprep.mubr.bf16.mxu1 %v734_v50 }
 0x167   : > { %v757_v19 = vpop.xlane.xlu0 %756 }
 0x168   : > { %v803_v24 = vadd.f32 %v757_v19, %v739_v14 }
 0x16a   : > { %820 = vst.msk [vmem:[%s1381_s13] sm:$0xff] %vm264_vm7, %v803_v24  ;;  %901 = vmatmul.mubr.bf16.gmra.mxu0 %v1447_v58 }
 0x16b   : > { %925 = vmatmul.mubr.bf16.gmra.mxu1 %v733_v51  ;;  %v760_v8 = vpop.xlane.xlu1 %759 }
 0x16c   : > { %v804_v32 = vadd.f32 %v760_v8, %v740_v42  ;;  %932 = vmatprep.mubr.bf16.mxu1 %v736_v49 }
 0x16e   : > { %821 = vst.msk [vmem:[%s1381_s13 + $0x8] sm:$0xff] %vm264_vm7, %v804_v32 }
 0x16f   : > { %v763_v47 = vpop.xlane.xlu0 %762 }
 0x170   : > { %v805_v15 = vadd.f32 %v763_v47, %v741_v0 }
 0x172   : > { %822 = vst.msk [vmem:[%s1381_s13 + $0x10] sm:$0xff] %vm264_vm7, %v805_v15 }
 0x173   : > { %933 = vmatmul.mubr.bf16.gmra.mxu1 %v735_v38  ;;  %v766_v48 = vpop.xlane.xlu0 %765 }
 0x174   : > { %v806_v58 = vadd.f32 %v766_v48, %v742_v33  ;;  %940 = vmatprep.mubr.bf16.mxu1 %v1496_v34 }
 0x176   : > { %823 = vst.msk [vmem:[%s1381_s13 + $0x18] sm:$0xff] %vm264_vm7, %v806_v58 }
 0x177   : > { %v769_v54 = vpop.xlane.xlu1 %768 }
 0x178   : > { %v807_v55 = vadd.f32 %v769_v54, %v743_v53 }
 0x17a   : > { %824 = vst.msk [vmem:[%s1381_s13 + $0x20] sm:$0xff] %vm264_vm7, %v807_v55 }
 0x17b   : > { %941 = vmatmul.mubr.bf16.gmra.mxu1 %v1498_v43  ;;  %v772_v56 = vpop.xlane.xlu0 %771 }
 0x17c   : > { %v808_v57 = vadd.f32 %v772_v56, %v744_v40 }
 0x17e   : > { %825 = vst.msk [vmem:[%s1381_s13 + $0x28] sm:$0xff] %vm264_vm7, %v808_v57 }
 0x17f   : > { %v775_v60 = vpop.xlane.xlu1 %774 }
 0x180   : > { %v809_v61 = vadd.f32 %v775_v60, %v745_v59 }
 0x182   : > { %826 = vst.msk [vmem:[%s1381_s13 + $0x30] sm:$0xff] %vm264_vm7, %v809_v61 }
 0x183   : > { %v778_v63 = vpop.xlane.xlu0 %777 }
 0x184   : > { %v810_v1 = vadd.f32 %v778_v63, %v746_v62 }
 0x186   : > { %827 = vst.msk [vmem:[%s1381_s13 + $0x38] sm:$0xff] %vm264_vm7, %v810_v1 }
 0x187   : > { %v781_v2 = vpop.xlane.xlu1 %780 }
 0x188   : > { %v811_v3 = vadd.f32 %v781_v2, %v747_v41 }
 0x18a   : > { %828 = vst.msk [vmem:[%s1381_s13 + $0x40] sm:$0xff] %vm264_vm7, %v811_v3 }
 0x18b   : > { %v784_v5 = vpop.xlane.xlu0 %783 }
 0x18c   : > { %v812_v6 = vadd.f32 %v784_v5, %v748_v4 }
 0x18e   : > { %829 = vst.msk [vmem:[%s1381_s13 + $0x48] sm:$0xff] %vm264_vm7, %v812_v6 }
 0x18f   : > { %v787_v9 = vpop.xlane.xlu1 %786 }
 0x190   : > { %v813_v44 = vadd.f32 %v787_v9, %v749_v7 }
 0x192   : > { %830 = vst.msk [vmem:[%s1381_s13 + $0x50] sm:$0xff] %vm264_vm7, %v813_v44 }
 0x193   : > { %v790_v11 = vpop.xlane.xlu0 %789 }
 0x194   : > { %v814_v37 = vadd.f32 %v790_v11, %v750_v10 }
 0x196   : > { %831 = vst.msk [vmem:[%s1381_s13 + $0x58] sm:$0xff] %vm264_vm7, %v814_v37 }
 0x197   : > { %v793_v13 = vpop.xlane.xlu1 %792 }
 0x198   : > { %v815_v16 = vadd.f32 %v793_v13, %v751_v12 }
 0x19a   : > { %832 = vst.msk [vmem:[%s1381_s13 + $0x60] sm:$0xff] %vm264_vm7, %v815_v16 }
 0x19b   : > { %v796_v18 = vpop.xlane.xlu0 %795 }
 0x19c   : > { %v816_v45 = vadd.f32 %v796_v18, %v752_v17 }
 0x19e   : > { %833 = vst.msk [vmem:[%s1381_s13 + $0x68] sm:$0xff] %vm264_vm7, %v816_v45 }
 0x19f   : > { %v799_v21 = vpop.xlane.xlu1 %798 }
 0x1a0   : > { %v817_v22 = vadd.f32 %v799_v21, %v753_v20 }
 0x1a2   : > { %834 = vst.msk [vmem:[%s1381_s13 + $0x70] sm:$0xff] %vm264_vm7, %v817_v22 }
 0x1a4   : > { %v802_v23 = vpop.xlane.xlu0 %801 }
 0x1a5   : > { %v818_v25 = vadd.f32 %v802_v23, %v754_v39 }
 0x1a7   : > { %835 = vst.msk [vmem:[%s1381_s13 + $0x78] sm:$0xff] %vm264_vm7, %v818_v25 }
 0x21a   : > { %v886_v26 = vpop.f32.mrf.mxu0 }
 0x21b   : > { %v910_v27 = vpop.f32.mrf.mxu1  ;;  %965 = vst [vmem:[%s1587_s19] sm:$0xff] %v886_v26 }
 0x21c   : > { %v888_v28 = vpop.f32.mrf.mxu0  ;;  %971 = vst [vmem:[%s1587_s19 + $0x30] sm:$0xff] %v910_v27 }
 0x21d   : > { %v912_v29 = vpop.f32.mrf.mxu1 }
 0x21e   : > { %v889_v30 = vpop.f32.mrf.mxu0 }
 0x21f   : > { %v913_v36 = vpop.f32.mrf.mxu1  ;;  %966 = vst [vmem:[%s1587_s19 + $0x8] sm:$0xff] %v889_v30 }
 0x220   : > { %v891_v31 = vpop.f32.mrf.mxu0  ;;  %972 = vst [vmem:[%s1587_s19 + $0x38] sm:$0xff] %v913_v36 }
 0x221   : > { %v915_v34 = vpop.f32.mrf.mxu1 }
 0x222   : > { %v894_v35 = vpop.f32.mrf.mxu0 }
 0x223   : > { %v918_v43 = vpop.f32.mrf.mxu1  ;;  %967 = vst [vmem:[%s1587_s19 + $0x10] sm:$0xff] %v894_v35 }
 0x224   : > { %v896_v49 = vpop.f32.mrf.mxu0  ;;  %973 = vst [vmem:[%s1587_s19 + $0x40] sm:$0xff] %v918_v43 }
 0x225   : > { %v920_v38 = vpop.f32.mrf.mxu1 }
 0x226   : > { %v897_v50 = vpop.f32.mrf.mxu0 }
 0x227   : > { %v921_v51 = vpop.f32.mrf.mxu1  ;;  %968 = vst [vmem:[%s1587_s19 + $0x18] sm:$0xff] %v897_v50 }
 0x228   : > { %v899_v52 = vpop.f32.mrf.mxu0  ;;  %974 = vst [vmem:[%s1587_s19 + $0x48] sm:$0xff] %v921_v51 }
 0x229   : > { %v923_v46 = vpop.f32.mrf.mxu1 }
 0x22a   : > { %v902_v14 = vpop.f32.mrf.mxu0 }
 0x22b   : > { %v926_v19 = vpop.f32.mrf.mxu1  ;;  %969 = vst [vmem:[%s1587_s19 + $0x20] sm:$0xff] %v902_v14 }
 0x22c   : > { %v904_v24 = vpop.f32.mrf.mxu0  ;;  %975 = vst [vmem:[%s1587_s19 + $0x50] sm:$0xff] %v926_v19 }
 0x22d   : > { %v928_v42 = vpop.f32.mrf.mxu1 }
 0x22e   : > { %v905_v8 = vpop.f32.mrf.mxu0 }
 0x22f   : > { %v929_v32 = vpop.f32.mrf.mxu1  ;;  %970 = vst [vmem:[%s1587_s19 + $0x28] sm:$0xff] %v905_v8 }
 0x230   : > { %v907_v0 = vpop.f32.mrf.mxu0  ;;  %976 = vst [vmem:[%s1587_s19 + $0x58] sm:$0xff] %v929_v32 }
 0x231   : > { %v931_v47 = vpop.f32.mrf.mxu1 }
 0x233   : > { %v934_v15 = vpop.f32.mrf.mxu1 }
 0x234   : > { %977 = vst [vmem:[%s1587_s19 + $0x60] sm:$0xff] %v934_v15 }
 0x235   : > { %v936_v33 = vpop.f32.mrf.mxu1 }
 0x237   : > { %v937_v48 = vpop.f32.mrf.mxu1 }
 0x238   : > { %978 = vst [vmem:[%s1587_s19 + $0x68] sm:$0xff] %v937_v48 }
 0x239   : > { %v939_v58 = vpop.f32.mrf.mxu1 }
 0x23b   : > { %v942_v53 = vpop.f32.mrf.mxu1 }
 0x23c   : > { %979 = vst [vmem:[%s1587_s19 + $0x70] sm:$0xff] %v942_v53 }
 0x23d   : > { %v944_v54 = vpop.f32.mrf.mxu1 }
 0x23f   : > { %v945_v55 = vpop.f32.mrf.mxu1 }
 0x240   : > { %980 = vst [vmem:[%s1587_s19 + $0x78] sm:$0xff] %v945_v55 }
 0x241   : > { %v947_v40 = vpop.f32.mrf.mxu1 }
 0x242 PF: > { %s15_s17 = sadd.s32 1, %s1199_s17   ;;  %s1619_s15 = smov %s1195_s16 }
 0x243   : > { %p12_p5 = scmp.ge.s32.totalorder %s15_s17, 4   ;;  %s1620_s16 = smov %s1622_s18 }
 0x245   :  { %14 = sbr.rel (!%p12_p5) target bundleno = 2 (0x2), region = 81 }

// kernel: color_augmentation_forward.3
= control target key start
LH: loop header
LB: loop body
LE: loop exit
PB: predicated region body
PF: predicated region fallthrough
CT: control target
= control target key end

     0   :  { %14 = vsyncpa [#allocation3], 0  ;;  %s1707_s27 = smov 0   ;;  %s1709_s28 = smov 0   ;;  %s2194_s0 = inlined_call_operand.vmem [shape: f32[2,3,256], index: 0, kind: input, shape index: {}]   ;;  %s2195_s1 = inlined_call_operand.vmem [shape: f32[2,128,1], index: 1, kind: input, shape index: {}]   ;;  %s2196_s2 = inlined_call_operand.vmem [shape: f32[128,1], index: 2, kind: input, shape index: {}]   ;;  %s2197_s3 = inlined_call_operand.vmem [shape: f32[3,2], index: 3, kind: input, shape index: {}]   ;;  %s2198_s4 = inlined_call_operand.vmem [shape: f32[128,3], index: 4, kind: input, shape index: {}]   ;;  %s2199_s5 = inlined_call_operand.vmem [shape: bf16[128,128], index: 5, kind: input, shape index: {}]   ;;  %s2200_s6 = inlined_call_operand.vmem [shape: f32[6,128], index: 6, kind: input, shape index: {}]   ;;  %s2201_s7 = inlined_call_operand.vmem [shape: f32[2,3,256], index: 7, kind: output, shape index: {0}]   ;;  %s2202_s8 = inlined_call_operand.vmem [shape: f32[2,3,256], index: 8, kind: output, shape index: {1}]  }
   0x1   :  { %s1711_s29 = smov 0  }
   0x2 LB: > { %s1504_s30 = sadd.s32 4294967295, %s1657_s29   ;;  %s32_s9 = sadd.s32 1, %s1653_s28  ;;  %s1657_s29 = sphi %s1711_s29, %s20_s29   ;;  %s1653_s28 = sphi %s1709_s28, %s2206_s28   ;;  %s1649_s27 = sphi %s1707_s27, %s2205_s27  }
   0x3   : > { %p34_p0 = scmp.ge.s32.totalorder %s32_s9, 2  ;;  %p1506_p1 = scmp.ge.s32.totalorder %s1657_s29, 1 }
   0x4   : > { %p252_p2 = scmp.lt.s32.totalorder %s1657_s29, 3  ;;  %p1732_p4 = scmp.eq.s32.totalorder %s1504_s30, 0 }
   0x5   : > { %s2208_s9 = smov (%p34_p0, %s32_s9), 0  ;;  %s268_s14 = sshll.u32 %s2197_s3, 4  ;;  %s269_s14 = int_to_ptr.vmem [resolvable:$true] %s268_s14 }
   0x6   : > { %p1728_p3 = pnand %p1506_p1, %p252_p2  ;;  %s1616_s15 = scalar_lea.vmem %s269_s14, 64 }
   0x7   : > { %p1617_p7 = scmp.ne.s32.totalorder %s269_s14, %s1616_s15  ;;  %p1624_p11 = scmp.lt.s32.totalorder %s269_s14, %s269_s14 }
   0x8   : > { %p1564_p5 = pneg %p1728_p3  ;;  %p1625_p12 = scmp.lt.s32.totalorder %s1616_s15, %s1616_s15 }
   0xa   : > { %p1565_p6 = pnand %p1732_p4, %p1564_p5  ;;  %p1626_p13 = por %p1625_p12, %p1624_p11 }
   0xc   : > { %p1618_p8 = pneg %p1565_p6 }
   0xe   : > { %p1619_p9 = pnand %p1618_p8, %p1617_p7 }
  0x10   : > { %p1620_p10 = pneg %p1619_p9 }
  0x12   : > { %p1627_p0 = pnand %p1626_p13, %p1620_p10 }
  0x14   : > { %1630 = shalt.err (!%p1627_p0)
}
  0x15   : > { %s1659_s16 = smov [#allocation2]   ;;  %311 = sbr.rel (%p1728_p3) target bundleno = 867 (0x363), region = 48 }
  0x16   : > { %1567 = dma.vmem_to_smem (!%p1565_p6), %s269_s14, 64, %s1659_s16, [#allocation3]  }
  0x1a   : > { %1644 = dma.done.wait (%p1732_p4), [#allocation3], 64  }
  0x1b   : > { %1646 = vsyncadd (%p1732_p4), [#allocation3], 4294967232 }
  0x1c   : > { %317 = sfence }
  0x1d   : > { %p369_p1 = scmp.lt.s32.totalorder %s1649_s27, 1  ;;  %v1660_v0 = vmov 0.0   ;;  %v1661_v1 = vmov 0   ;;  %vm568_vm0 = vcmask 1042432   ;;  %v404_v6 = vld [vmem:[%s2198_s4] sm:$0xff]  ;;  %vm519_vm1 = vcmask 23552  }
  0x1e   : > { %637 = vmatprep.mubr.f32.mxu0 %v1660_v0  ;;  %1597 = vset.pattern.permute.xlu0 %v1661_v1  ;;  %v405_v9 = vld [vmem:[%s2198_s4 + $0x8] sm:$0xff]  ;;  %v406_v12 = vld [vmem:[%s2198_s4 + $0x10] sm:$0xff]  ;;  %v407_v15 = vld [vmem:[%s2198_s4 + $0x18] sm:$0xff]  ;;  %s1217_s23 = sshra.s32 %s1649_s27, 7  ;;  %s1222_s30 = sand.u32 127, %s1649_s27 }
  0x1f   : > { %s370_s17 = scalar_select %p369_p1, %s1649_s27, 1  ;;  %1598 = vset.pattern.permute.xlu1 %v1661_v1  ;;  %1038 = vmatprep.mubr.bf16.mxu1 %v1661_v1  ;;  %v408_v18 = vld [vmem:[%s2198_s4 + $0x20] sm:$0xff]  ;;  %v409_v21 = vld [vmem:[%s2198_s4 + $0x28] sm:$0xff]  ;;  %v410_v24 = vld [vmem:[%s2198_s4 + $0x30] sm:$0xff] }
  0x20   : > { %v411_v27 = vld [vmem:[%s2198_s4 + $0x38] sm:$0xff]  ;;  %v876_v29 = vld [vmem:[%s2196_s2 + $0x70] sm:$0xff]  ;;  %v412_v30 = vld [vmem:[%s2198_s4 + $0x40] sm:$0xff]  ;;  %s2171_s24 = sshll.u32 %s1217_s23, 7  ;;  %s1216_s11 = sld [smem:[#allocation2 + %s1649_s27]] }
  0x21   : > { %s1755_s18 = sshll.u32 %s370_s17, 3  ;;  %s1553_s19 = sshll.u32 %s370_s17, 7  ;;  %v877_v28 = vld [vmem:[%s2196_s2 + $0x78] sm:$0xff]  ;;  %v875_v31 = vld [vmem:[%s2196_s2 + $0x68] sm:$0xff]  ;;  %v874_v32 = vld [vmem:[%s2196_s2 + $0x60] sm:$0xff] }
  0x22   : > { %s376_s22 = scalar_lea.vmem %s2194_s0, %s1755_s18  ;;  %s1764_s25 = scalar_lea.vmem %s2195_s1, %s1553_s19  ;;  %v413_v33 = vld [vmem:[%s2198_s4 + $0x48] sm:$0xff]  ;;  %v873_v34 = vld [vmem:[%s2196_s2 + $0x58] sm:$0xff]  ;;  %v872_v35 = vld [vmem:[%s2196_s2 + $0x50] sm:$0xff] }
  0x23   : > { %v420_v2 = vld [vmem:[%s376_s22] sm:$0x77]  ;;  %v435_v3 = vld [vmem:[%s1764_s25 + $0x70] sm:$0xff]  ;;  %v436_v7 = vld [vmem:[%s1764_s25 + $0x78] sm:$0xff]  ;;  %s1557_s26 = sadd.s32 128, %s2171_s24  ;;  %s1559_s27 = sadd.s32 256, %s2171_s24 }
  0x24   : > { %v518_v4 = vcombine.high %v420_v2, %v420_v2  ;;  %509 = vperm.xlu0 %1597, %v435_v3   ;;  %v433_v5 = vld [vmem:[%s1764_s25 + $0x60] sm:$0xff]  ;;  %v434_v8 = vld [vmem:[%s1764_s25 + $0x68] sm:$0xff]  ;;  %v431_v10 = vld [vmem:[%s1764_s25 + $0x50] sm:$0xff]  ;;  %s1223_s10 = sadd.s32 %s1557_s26, %s1222_s30  ;;  %s1227_s12 = sadd.s32 %s1559_s27, %s1222_s30 }
  0x25   : > { %499 = vperm.xlu1 %1598, %v433_v5   ;;  %v432_v11 = vld [vmem:[%s1764_s25 + $0x58] sm:$0xff]  ;;  %v429_v13 = vld [vmem:[%s1764_s25 + $0x40] sm:$0xff]  ;;  %v430_v14 = vld [vmem:[%s1764_s25 + $0x48] sm:$0xff]  ;;  %s1228_s13 = sld [smem:[#allocation2 + %s1227_s12]]  ;;  %s391_s16 = scalar_lea.vmem %s2201_s7, %s1755_s18 }
  0x26   : > { %1519 = vmatprep.subr.msk.mxu0 %vm568_vm0, %v518_v4  ;;  %v427_v16 = vld [vmem:[%s1764_s25 + $0x30] sm:$0xff]  ;;  %v428_v17 = vld [vmem:[%s1764_s25 + $0x38] sm:$0xff]  ;;  %v425_v19 = vld [vmem:[%s1764_s25 + $0x20] sm:$0xff]  ;;  %s401_s20 = scalar_lea.vmem %s2202_s8, %s1755_s18 }
  0x27   : > { %1520 = vmatpush1.msk.msra.mxu0 %vm568_vm0, %v420_v2  ;;  %v426_v20 = vld [vmem:[%s1764_s25 + $0x28] sm:$0xff]  ;;  %v423_v22 = vld [vmem:[%s1764_s25 + $0x10] sm:$0xff]  ;;  %v424_v23 = vld [vmem:[%s1764_s25 + $0x18] sm:$0xff] }
  0x28   : > { %1521 = vmatmul.mubr.msk.f32.vlgmr.msra.gmra.mxu0 %vm519_vm1, %v404_v6  ;;  %514 = vperm.xlu0 %1597, %v436_v7   ;;  %v421_v25 = vld [vmem:[%s1764_s25] sm:$0xff]  ;;  %v422_v26 = vld [vmem:[%s1764_s25 + $0x8] sm:$0xff]  ;;  %v414_v36 = vld [vmem:[%s2198_s4 + $0x50] sm:$0xff]  ;;  %s1224_s25 = sld [smem:[#allocation2 + %s1223_s10]] }
  0x29   : > { %643 = vmatprep.mubr.f32.mxu0 %v1660_v0  ;;  %504 = vperm.xlu1 %1598, %v434_v8   ;;  %v871_v37 = vld [vmem:[%s2196_s2 + $0x48] sm:$0xff]  ;;  %v870_v38 = vld [vmem:[%s2196_s2 + $0x40] sm:$0xff]  ;;  %v415_v39 = vld [vmem:[%s2198_s4 + $0x58] sm:$0xff] }
  0x2a   : > { %v869_v40 = vld [vmem:[%s2196_s2 + $0x38] sm:$0xff]  ;;  %v868_v41 = vld [vmem:[%s2196_s2 + $0x30] sm:$0xff]  ;;  %v416_v42 = vld [vmem:[%s2198_s4 + $0x60] sm:$0xff] }
  0x2b   : > { %v867_v43 = vld [vmem:[%s2196_s2 + $0x28] sm:$0xff]  ;;  %v866_v44 = vld [vmem:[%s2196_s2 + $0x20] sm:$0xff]  ;;  %v865_v46 = vld [vmem:[%s2196_s2 + $0x18] sm:$0xff] }
  0x2c   : > { %1522 = vmatmul.mubr.msk.f32.gmra.mxu0 %vm519_vm1, %v405_v9  ;;  %489 = vperm.xlu0 %1597, %v431_v10   ;;  %v417_v45 = vld [vmem:[%s2198_s4 + $0x68] sm:$0xff]  ;;  %v864_v47 = vld [vmem:[%s2196_s2 + $0x10] sm:$0xff]  ;;  %v862_v50 = vld [vmem:[%s2196_s2] sm:$0xff] }
  0x2d   : > { %649 = vmatprep.mubr.f32.mxu0 %v1660_v0  ;;  %494 = vperm.xlu1 %1598, %v432_v11   ;;  %v418_v48 = vld [vmem:[%s2198_s4 + $0x70] sm:$0xff]  ;;  %v863_v49 = vld [vmem:[%s2196_s2 + $0x8] sm:$0xff]  ;;  %v419_v51 = vld [vmem:[%s2198_s4 + $0x78] sm:$0xff] }
  0x30   : > { %1523 = vmatmul.mubr.msk.f32.gmra.mxu0 %vm519_vm1, %v406_v12  ;;  %479 = vperm.xlu0 %1597, %v429_v13  }
  0x31   : > { %655 = vmatprep.mubr.f32.mxu0 %v1660_v0  ;;  %484 = vperm.xlu1 %1598, %v430_v14  }
  0x34   : > { %1524 = vmatmul.mubr.msk.f32.gmra.mxu0 %vm519_vm1, %v407_v15  ;;  %469 = vperm.xlu0 %1597, %v427_v16  }
  0x35   : > { %661 = vmatprep.mubr.f32.mxu0 %v1660_v0  ;;  %474 = vperm.xlu1 %1598, %v428_v17  }
  0x38   : > { %1525 = vmatmul.mubr.msk.f32.gmra.mxu0 %vm519_vm1, %v408_v18  ;;  %459 = vperm.xlu0 %1597, %v425_v19  }
  0x39   : > { %667 = vmatprep.mubr.f32.mxu0 %v1660_v0  ;;  %464 = vperm.xlu1 %1598, %v426_v20  }
  0x3c   : > { %1526 = vmatmul.mubr.msk.f32.gmra.mxu0 %vm519_vm1, %v409_v21  ;;  %449 = vperm.xlu0 %1597, %v423_v22  }
  0x3d   : > { %673 = vmatprep.mubr.f32.mxu0 %v1660_v0  ;;  %454 = vperm.xlu1 %1598, %v424_v23  }
  0x40   : > { %1527 = vmatmul.mubr.msk.f32.gmra.mxu0 %vm519_vm1, %v410_v24  ;;  %439 = vperm.xlu0 %1597, %v421_v25  }
  0x41   : > { %679 = vmatprep.mubr.f32.mxu0 %v1660_v0  ;;  %444 = vperm.xlu1 %1598, %v422_v26  }
  0x44   : > { %1528 = vmatmul.mubr.msk.f32.gmra.mxu0 %vm519_vm1, %v411_v27  ;;  %955 = vperm.xlu0 %1597, %v877_v28  }
  0x45   : > { %685 = vmatprep.mubr.f32.mxu0 %v1660_v0  ;;  %950 = vperm.xlu1 %1598, %v876_v29  }
  0x48   : > { %1529 = vmatmul.mubr.msk.f32.gmra.mxu0 %vm519_vm1, %v412_v30  ;;  %945 = vperm.xlu0 %1597, %v875_v31  }
  0x49   : > { %691 = vmatprep.mubr.f32.mxu0 %v1660_v0  ;;  %940 = vperm.xlu1 %1598, %v874_v32  }
  0x4c   : > { %1530 = vmatmul.mubr.msk.f32.gmra.mxu0 %vm519_vm1, %v413_v33  ;;  %935 = vperm.xlu0 %1597, %v873_v34  }
  0x4d   : > { %697 = vmatprep.mubr.f32.mxu0 %v1660_v0  ;;  %930 = vperm.xlu1 %1598, %v872_v35  }
  0x50   : > { %1531 = vmatmul.mubr.msk.f32.gmra.mxu0 %vm519_vm1, %v414_v36  ;;  %925 = vperm.xlu0 %1597, %v871_v37  }
  0x51   : > { %703 = vmatprep.mubr.f32.mxu0 %v1660_v0  ;;  %920 = vperm.xlu1 %1598, %v870_v38  }
  0x54   : > { %1532 = vmatmul.mubr.msk.f32.gmra.mxu0 %vm519_vm1, %v415_v39  ;;  %915 = vperm.xlu0 %1597, %v869_v40  }
  0x55   : > { %709 = vmatprep.mubr.f32.mxu0 %v1660_v0  ;;  %910 = vperm.xlu1 %1598, %v868_v41  }
  0x58   : > { %1533 = vmatmul.mubr.msk.f32.gmra.mxu0 %vm519_vm1, %v416_v42  ;;  %905 = vperm.xlu0 %1597, %v867_v43  }
  0x59   : > { %715 = vmatprep.mubr.f32.mxu0 %v1660_v0  ;;  %900 = vperm.xlu1 %1598, %v866_v44  }
  0x5c   : > { %1534 = vmatmul.mubr.msk.f32.gmra.mxu0 %vm519_vm1, %v417_v45  ;;  %895 = vperm.xlu0 %1597, %v865_v46  }
  0x5d   : > { %721 = vmatprep.mubr.f32.mxu0 %v1660_v0  ;;  %890 = vperm.xlu1 %1598, %v864_v47  }
  0x60   : > { %1535 = vmatmul.mubr.msk.f32.gmra.mxu0 %vm519_vm1, %v418_v48  ;;  %885 = vperm.xlu0 %1597, %v863_v49  }
  0x61   : > { %727 = vmatprep.mubr.f32.mxu0 %v1660_v0  ;;  %880 = vperm.xlu1 %1598, %v862_v50  }
  0x64   : > { %1536 = vmatmul.mubr.msk.f32.gmra.mxu0 %vm519_vm1, %v419_v51 }
  0x65   : > { %1299 = vmatprep.mubr.f32.mxu0 %v1660_v0 }
  0x9f   : > { %v1910_v52 = vpop.permute.xlu0 %509 }
  0xa0   : > { %v1912_v53 = vpop.permute.xlu1 %499 }
  0xa3   : > { %v1914_v54 = vpop.permute.xlu0 %514 }
  0xa4   : > { %v1916_v55 = vpop.permute.xlu1 %504 }
  0xa7   : > { %v1918_v56 = vpop.permute.xlu0 %489 }
  0xa8   : > { %v1920_v57 = vpop.permute.xlu1 %494 }
  0xab   : > { %v1922_v58 = vpop.permute.xlu0 %479 }
  0xac   : > { %v1924_v59 = vpop.permute.xlu1 %484 }
  0xaf   : > { %v1926_v60 = vpop.permute.xlu0 %469 }
  0xb0   : > { %v1928_v61 = vpop.permute.xlu1 %474 }
  0xb3   : > { %v1930_v62 = vpop.permute.xlu0 %459 }
  0xb4   : > { %v1932_v63 = vpop.permute.xlu1 %464 }
  0xb7   : > { %v450_v0 = vpop.permute.xlu0 %449 }
  0xb8   : > { %v455_v2 = vpop.permute.xlu1 %454 }
  0xbb   : > { %v440_v3 = vpop.permute.xlu0 %439 }
  0xbc   : > { %v445_v7 = vpop.permute.xlu1 %444 }
  0xe8   : > { %v639_v4 = vpop.f32.mrf.mxu0 }
  0xe9   : > { %v640_v5 = vadd.f32 %v639_v4, %v440_v3 }
  0xea   : > { %v641_v6 = vpop.f32.mrf.mxu0 }
  0xeb   : > { %v642_v8 = vadd.f32 %v641_v6, %v440_v3  ;;  %v766_v9 = vmul.f32 0.2, %v640_v5  ;;  %vm734_vm2 = vcmp.ge.f32.partialorder %v640_v5, 0.0 }
  0xec   : > { %v645_v10 = vpop.f32.mrf.mxu0 }
  0xed   : > { %v646_v11 = vadd.f32 %v645_v10, %v445_v7  ;;  %v767_v13 = vmul.f32 0.2, %v642_v8  ;;  %vm735_vm4 = vcmp.ge.f32.partialorder %v642_v8, 0.0  ;;  %v1934_v17 = vsel %vm734_vm2, %v640_v5, %v766_v9 }
  0xee   : > { %v647_v12 = vpop.f32.mrf.mxu0 }
  0xef   : > { %vm736_vm3 = vcmp.ge.f32.partialorder %v646_v11, 0.0  ;;  %v768_v14 = vmul.f32 0.2, %v646_v11  ;;  %v648_v15 = vadd.f32 %v647_v12, %v445_v7  ;;  %v1940_v24 = vsel %vm735_vm4, %v642_v8, %v767_v13 }
  0xf0   : > { %v651_v16 = vpop.f32.mrf.mxu0 }
  0xf1   : > { %vm737_vm5 = vcmp.ge.f32.partialorder %v648_v15, 0.0  ;;  %v769_v18 = vmul.f32 0.2, %v648_v15  ;;  %v652_v19 = vadd.f32 %v651_v16, %v450_v0  ;;  %v1936_v20 = vsel %vm736_vm3, %v646_v11, %v768_v14 }
  0xf2   : > { %v653_v21 = vpop.f32.mrf.mxu0  ;;  %v846_v22 = vpack.c.bf16 %v1936_v20, %v1934_v17  ;;  %v1603_v17 = vld [vmem:[%s2199_s5 + $0x18] sm:$0xff]   ;;  %v1604_v20 = vld [vmem:[%s2199_s5 + $0x20] sm:$0xff]  }
  0xf3   : > { %v654_v23 = vadd.f32 %v653_v21, %v450_v0  ;;  %v1942_v25 = vsel %vm737_vm5, %v648_v15, %v769_v18  ;;  %v770_v28 = vmul.f32 0.2, %v652_v19  ;;  %vm738_vm6 = vcmp.ge.f32.partialorder %v652_v19, 0.0 }
  0xf4   : > { %v657_v26 = vpop.f32.mrf.mxu0  ;;  %v847_v27 = vpack.c.bf16 %v1942_v25, %v1940_v24  ;;  %v1602_v24 = vld [vmem:[%s2199_s5 + $0x10] sm:$0xff]  }
  0xf5   : > { %v658_v29 = vadd.f32 %v657_v26, %v455_v2  ;;  %v771_v31 = vmul.f32 0.2, %v654_v23  ;;  %vm739_vm8 = vcmp.ge.f32.partialorder %v654_v23, 0.0  ;;  %v1948_v36 = vsel %vm738_vm6, %v652_v19, %v770_v28  ;;  %v1606_v25 = vld [vmem:[%s2199_s5 + $0x30] sm:$0xff]  }
  0xf6   : > { %v659_v30 = vpop.f32.mrf.mxu0 }
  0xf7   : > { %vm740_vm7 = vcmp.ge.f32.partialorder %v658_v29, 0.0  ;;  %v772_v32 = vmul.f32 0.2, %v658_v29  ;;  %v660_v33 = vadd.f32 %v659_v30, %v455_v2  ;;  %v1954_v40 = vsel %vm739_vm8, %v654_v23, %v771_v31 }
  0xf8   : > { %v1946_v34 = vpop.f32.mrf.mxu0 }
  0xf9   : > { %vm741_vm9 = vcmp.ge.f32.partialorder %v660_v33, 0.0  ;;  %v773_v35 = vmul.f32 0.2, %v660_v33  ;;  %v1950_v37 = vsel %vm740_vm7, %v658_v29, %v772_v32 }
  0xfa   : > { %v665_v38 = vpop.f32.mrf.mxu0  ;;  %v848_v39 = vpack.c.bf16 %v1950_v37, %v1948_v36  ;;  %v1601_v36 = vld [vmem:[%s2199_s5 + $0x8] sm:$0xff]  }
  0xfb   : > { %v1956_v41 = vsel %vm741_vm9, %v660_v33, %v773_v35  ;;  %v1969_v11 = vadd.f32 %v665_v38, %v1930_v62 }
  0xfc   : > { %v669_v42 = vpop.f32.mrf.mxu0  ;;  %v849_v43 = vpack.c.bf16 %v1956_v41, %v1954_v40 }
  0xfd   : > { %v1973_v14 = vadd.f32 %v669_v42, %v1932_v63 }
  0xfe   : > { %v1960_v44 = vpop.f32.mrf.mxu0 }
 0x100   : > { %v1962_v45 = vpop.f32.mrf.mxu0 }
 0x102   : > { %v677_v46 = vpop.f32.mrf.mxu0 }
 0x103   : > { %v1976_v15 = vadd.f32 %v677_v46, %v1926_v60 }
 0x104   : > { %v681_v47 = vpop.f32.mrf.mxu0 }
 0x105   : > { %v1979_v16 = vadd.f32 %v681_v47, %v1928_v61 }
 0x106   : > { %v1964_v48 = vpop.f32.mrf.mxu0 }
 0x108   : > { %v1966_v49 = vpop.f32.mrf.mxu0 }
 0x10a   : > { %v689_v50 = vpop.f32.mrf.mxu0 }
 0x10b   : > { %v1983_v19 = vadd.f32 %v689_v50, %v1922_v58 }
 0x10c   : > { %v693_v51 = vpop.f32.mrf.mxu0 }
 0x10d   : > { %v1986_v21 = vadd.f32 %v693_v51, %v1924_v59  ;;  %vm751_vm7 = vcmp.ge.f32.partialorder %v1983_v19, 0.0 }
 0x10e   : > { %v695_v0 = vpop.f32.mrf.mxu0 }
 0x10f   : > { %v1989_v23 = vadd.f32 %v695_v0, %v1924_v59  ;;  %vm752_vm8 = vcmp.ge.f32.partialorder %v1986_v21, 0.0 }
 0x110   : > { %v699_v2 = vpop.f32.mrf.mxu0 }
 0x111   : > { %v1993_v29 = vadd.f32 %v699_v2, %v1918_v56  ;;  %vm753_vm5 = vcmp.ge.f32.partialorder %v1989_v23, 0.0 }
 0x112   : > { %v701_v3 = vpop.f32.mrf.mxu0 }
 0x113   : > { %v702_v30 = vadd.f32 %v701_v3, %v1918_v56  ;;  %vm754_vm6 = vcmp.ge.f32.partialorder %v1993_v29, 0.0 }
 0x114   : > { %v705_v4 = vpop.f32.mrf.mxu0 }
 0x115   : > { %v706_v33 = vadd.f32 %v705_v4, %v1920_v57  ;;  %vm755_vm3 = vcmp.ge.f32.partialorder %v702_v30, 0.0 }
 0x116   : > { %v707_v5 = vpop.f32.mrf.mxu0 }
 0x117   : > { %v708_v35 = vadd.f32 %v707_v5, %v1920_v57  ;;  %vm756_vm4 = vcmp.ge.f32.partialorder %v706_v33, 0.0 }
 0x118   : > { %v711_v6 = vpop.f32.mrf.mxu0 }
 0x119   : > { %v712_v50 = vadd.f32 %v711_v6, %v1912_v53  ;;  %v789_v2 = vmul.f32 0.2, %v708_v35  ;;  %vm757_vm1 = vcmp.ge.f32.partialorder %v708_v35, 0.0 }
 0x11a   : > { %v713_v7 = vpop.f32.mrf.mxu0 }
 0x11b   : > { %v714_v31 = vadd.f32 %v713_v7, %v1912_v53  ;;  %v787_v53 = vmul.f32 0.2, %v702_v30  ;;  %vm758_vm2 = vcmp.ge.f32.partialorder %v712_v50, 0.0 }
 0x11c   : > { %v717_v8 = vpop.f32.mrf.mxu0 }
 0x11d   : > { %v718_v38 = vadd.f32 %v717_v8, %v1916_v55  ;;  %v791_v51 = vmul.f32 0.2, %v714_v31  ;;  %vm759_vm15 = vcmp.ge.f32.partialorder %v714_v31, 0.0 }
 0x11e   : > { %v719_v9 = vpop.f32.mrf.mxu0 }
 0x11f   : > { %v720_v12 = vadd.f32 %v719_v9, %v1916_v55  ;;  %v792_v57 = vmul.f32 0.2, %v718_v38  ;;  %vm760_vm0 = vcmp.ge.f32.partialorder %v718_v38, 0.0  ;;  %v823_v9 = vsel %vm759_vm15, %v714_v31, %v791_v51 }
 0x120   : > { %v723_v10 = vpop.f32.mrf.mxu0  ;;  %v786_v31 = vmul.f32 0.2, %v1993_v29  ;;  %v664_v51 = vadd.f32 %v1946_v34, %v1930_v62  ;;  %vm743_vm15 = vcmp.ge.f32.partialorder %v1969_v11, 0.0 }
 0x121   : > { %v724_v26 = vadd.f32 %v723_v10, %v1910_v52  ;;  %v793_v59 = vmul.f32 0.2, %v720_v12  ;;  %vm761_vm11 = vcmp.ge.f32.partialorder %v720_v12, 0.0  ;;  %v788_v10 = vmul.f32 0.2, %v706_v33 }
 0x122   : > { %v725_v13 = vpop.f32.mrf.mxu0  ;;  %v774_v34 = vmul.f32 0.2, %v664_v51 }
 0x123   : > { %v726_v18 = vadd.f32 %v725_v13, %v1910_v52  ;;  %v794_v56 = vmul.f32 0.2, %v724_v26  ;;  %vm762_vm14 = vcmp.ge.f32.partialorder %v724_v26, 0.0  ;;  %v825_v5 = vsel %vm761_vm11, %v720_v12, %v793_v59 }
 0x124   : > { %v729_v28 = vpop.f32.mrf.mxu0  ;;  %v859_v13 = vpack.c.bf16 %v825_v5, %v823_v9  ;;  %v821_v12 = vsel %vm757_vm1, %v708_v35, %v789_v2  ;;  %v784_v35 = vmul.f32 0.2, %v1986_v21  ;;  %vm747_vm11 = vcmp.ge.f32.partialorder %v1976_v15, 0.0 }
 0x125   : > { %v730_v32 = vadd.f32 %v729_v28, %v1914_v54  ;;  %v795_v46 = vmul.f32 0.2, %v726_v18  ;;  %vm763_vm12 = vcmp.ge.f32.partialorder %v726_v18, 0.0  ;;  %v826_v8 = vsel %vm762_vm14, %v724_v26, %v794_v56 }
 0x126   : > { %v731_v42 = vpop.f32.mrf.mxu0  ;;  %v824_v28 = vsel %vm760_vm0, %v718_v38, %v792_v57  ;;  %v688_v26 = vadd.f32 %v1966_v49, %v1922_v58  ;;  %v783_v38 = vmul.f32 0.2, %v1983_v19  ;;  %v820_v58 = vsel %vm756_vm4, %v706_v33, %v788_v10 }
 0x127   : > { %v796_v52 = vmul.f32 0.2, %v730_v32  ;;  %v732_v47 = vadd.f32 %v731_v42, %v1914_v54  ;;  %vm764_vm10 = vcmp.ge.f32.partialorder %v730_v32, 0.0  ;;  %v827_v3 = vsel %vm763_vm12, %v726_v18, %v795_v46 }
 0x128   : > { %v790_v54 = vmul.f32 0.2, %v712_v50  ;;  %v785_v18 = vmul.f32 0.2, %v1989_v23  ;;  %v672_v49 = vadd.f32 %v1960_v44, %v1932_v63  ;;  %v818_v33 = vsel %vm754_vm6, %v1993_v29, %v786_v31 }
 0x129   : > { %v797_v0 = vmul.f32 0.2, %v732_v47  ;;  %vm765_vm13 = vcmp.ge.f32.partialorder %v732_v47, 0.0  ;;  %v828_v55 = vsel %vm764_vm10, %v730_v32, %v796_v52  ;;  %v684_v32 = vadd.f32 %v1964_v48, %v1928_v61 }
 0x12a   : > { %v860_v6 = vpack.c.bf16 %v828_v55, %v826_v8  ;;  %v822_v59 = vsel %vm758_vm2, %v712_v50, %v790_v54  ;;  %v819_v48 = vsel %vm755_vm3, %v702_v30, %v787_v53  ;;  %v817_v52 = vsel %vm753_vm5, %v1989_v23, %v785_v18 }
 0x12b   : > { %v829_v4 = vsel %vm765_vm13, %v732_v47, %v797_v0  ;;  %v858_v61 = vpack.c.bf16 %v824_v28, %v822_v59  ;;  %v857_v42 = vpack.c.bf16 %v821_v12, %v819_v48  ;;  %v781_v46 = vmul.f32 0.2, %v684_v32 }
 0x12c   : > { %v861_v7 = vpack.c.bf16 %v829_v4, %v827_v3  ;;  %v676_v30 = vadd.f32 %v1962_v45, %v1926_v60  ;;  %vm749_vm9 = vcmp.ge.f32.partialorder %v684_v32, 0.0  ;;  %v782_v47 = vmul.f32 0.2, %v688_v26 }
 0x12d   : > { %v779_v63 = vmul.f32 0.2, %v1976_v15  ;;  %vm750_vm10 = vcmp.ge.f32.partialorder %v688_v26, 0.0  ;;  %v856_v44 = vpack.c.bf16 %v820_v58, %v818_v33  ;;  %v815_v50 = vsel %vm751_vm7, %v1983_v19, %v783_v38 }
 0x12e   : > { %1006 = vmatprep.subr.bf16.mxu1 %v861_v7  ;;  %v780_v23 = vmul.f32 0.2, %v1979_v16  ;;  %v855_v60 = vpack.c.bf16 %v817_v52, %v815_v50  ;;  %v816_v45 = vsel %vm752_vm8, %v1986_v21, %v784_v35  ;;  %v777_v56 = vmul.f32 0.2, %v672_v49 }
 0x12f   : > { %1007 = vmatpush1.bf16.msra.mxu1 %v860_v6  ;;  %vm748_vm12 = vcmp.ge.f32.partialorder %v1979_v16, 0.0  ;;  %v813_v29 = vsel %vm749_vm9, %v684_v32, %v781_v46  ;;  %vm745_vm13 = vcmp.ge.f32.partialorder %v672_v49, 0.0  ;;  %v778_v0 = vmul.f32 0.2, %v676_v30 }
 0x130   : > { %1008 = vmatprep.subr.bf16.mxu1 %v859_v13  ;;  %v814_v2 = vsel %vm750_vm10, %v688_v26, %v782_v47  ;;  %v775_v19 = vmul.f32 0.2, %v1969_v11  ;;  %vm746_vm14 = vcmp.ge.f32.partialorder %v676_v30, 0.0  ;;  %v811_v21 = vsel %vm747_vm11, %v1976_v15, %v779_v63 }
 0x131   : > { %v854_v57 = vpack.c.bf16 %v816_v45, %v814_v2  ;;  %v776_v55 = vmul.f32 0.2, %v1973_v14  ;;  %v853_v3 = vpack.c.bf16 %v813_v29, %v811_v21  ;;  %v812_v4 = vsel %vm748_vm12, %v1979_v16, %v780_v23 }
 0x132   : > { %vm744_vm0 = vcmp.ge.f32.partialorder %v1973_v14, 0.0  ;;  %v809_v62 = vsel %vm745_vm13, %v672_v49, %v777_v56  ;;  %v810_v5 = vsel %vm746_vm14, %v676_v30, %v778_v0  ;;  %vm742_vm1 = vcmp.ge.f32.partialorder %v664_v51, 0.0  ;;  %v951_v49 = vpop.permute.xlu1 %950 }
 0x133   : > { %1009 = vmatpush1.bf16.msra.mxu1 %v858_v61  ;;  %v852_v54 = vpack.c.bf16 %v812_v4, %v810_v5  ;;  %v807_v7 = vsel %vm743_vm15, %v1969_v11, %v775_v19  ;;  %v808_v15 = vsel %vm744_vm0, %v1973_v14, %v776_v55  ;;  %v806_v53 = vsel %vm742_vm1, %v664_v51, %v774_v34  ;;  %v1600_v11 = vld [vmem:[%s2199_s5] sm:$0xff]  }
 0x134   : > { %1010 = vmatprep.subr.bf16.mxu1 %v857_v42  ;;  %v851_v8 = vpack.c.bf16 %v809_v62, %v807_v7  ;;  %v850_v6 = vpack.c.bf16 %v808_v15, %v806_v53  ;;  %v956_v42 = vpop.permute.xlu0 %955 }
 0x136   : > { %v941_v33 = vpop.permute.xlu1 %940 }
 0x137   : > { %1011 = vmatpush1.bf16.msra.mxu1 %v856_v44 }
 0x138   : > { %1012 = vmatprep.subr.bf16.mxu1 %v855_v60  ;;  %v946_v30 = vpop.permute.xlu0 %945 }
 0x13a   : > { %v931_v60 = vpop.permute.xlu1 %930 }
 0x13b   : > { %1013 = vmatpush1.bf16.msra.mxu1 %v854_v57 }
 0x13c   : > { %1014 = vmatprep.subr.bf16.mxu1 %v853_v3  ;;  %v936_v50 = vpop.permute.xlu0 %935 }
 0x13e   : > { %v921_v55 = vpop.permute.xlu1 %920 }
 0x13f   : > { %1015 = vmatpush1.bf16.msra.mxu1 %v852_v54 }
 0x140   : > { %1016 = vmatprep.subr.bf16.mxu1 %v851_v8  ;;  %v926_v0 = vpop.permute.xlu0 %925 }
 0x143   : > { %1017 = vmatpush1.bf16.msra.mxu1 %v850_v6 }
 0x144   : > { %1018 = vmatprep.subr.bf16.mxu1 %v849_v43  ;;  %v916_v6 = vpop.permute.xlu0 %915 }
 0x147   : > { %1019 = vmatpush1.bf16.msra.mxu1 %v848_v39 }
 0x148   : > { %1020 = vmatprep.subr.bf16.mxu1 %v847_v27  ;;  %v1607_v27 = vld [vmem:[%s2199_s5 + $0x38] sm:$0xff]  }
 0x14b   : > { %1021 = vmatpush1.bf16.msra.mxu1 %v846_v22  ;;  %v1605_v22 = vld [vmem:[%s2199_s5 + $0x28] sm:$0xff]  }
 0x14e   : > { %1039 = vmatmul.mubr.bf16.vlgmr.msra.gmra.mxu1 %v1600_v11 }
 0x14f   : > { %1048 = vmatprep.mubr.bf16.mxu1 %v1661_v1 }
 0x156   : > { %1049 = vmatmul.mubr.bf16.gmra.mxu1 %v1601_v36 }
 0x157   : > { %1058 = vmatprep.mubr.bf16.mxu1 %v1661_v1 }
 0x15e   : > { %1059 = vmatmul.mubr.bf16.gmra.mxu1 %v1602_v24 }
 0x15f   : > { %1068 = vmatprep.mubr.bf16.mxu1 %v1661_v1 }
 0x166   : > { %1069 = vmatmul.mubr.bf16.gmra.mxu1 %v1603_v17 }
 0x167   : > { %1078 = vmatprep.mubr.bf16.mxu1 %v1661_v1 }
 0x16e   : > { %1079 = vmatmul.mubr.bf16.gmra.mxu1 %v1604_v20 }
 0x16f   : > { %1088 = vmatprep.mubr.bf16.mxu1 %v1661_v1 }
 0x176   : > { %1089 = vmatmul.mubr.bf16.gmra.mxu1 %v1605_v22 }
 0x177   : > { %1098 = vmatprep.mubr.bf16.mxu1 %v1661_v1 }
 0x17e   : > { %1099 = vmatmul.mubr.bf16.gmra.mxu1 %v1606_v25  ;;  %v911_v25 = vpop.permute.xlu1 %910 }
 0x17f   : > { %1108 = vmatprep.mubr.bf16.mxu1 %v1661_v1 }
 0x186   : > { %1109 = vmatmul.mubr.bf16.gmra.mxu1 %v1607_v27 }
 0x20e   : > { %v2092_v37 = vpop.f32.mrf.mxu1 }
 0x210   : > { %v2094_v39 = vpop.f32.mrf.mxu1 }
 0x212   : > { %v2096_v40 = vpop.f32.mrf.mxu1 }
 0x214   : > { %v2098_v41 = vpop.f32.mrf.mxu1 }
 0x216   : > { %v2100_v43 = vpop.f32.mrf.mxu1 }
 0x218   : > { %v2102_v14 = vpop.f32.mrf.mxu1 }
 0x21a   : > { %v2104_v16 = vpop.f32.mrf.mxu1 }
 0x21c   : > { %v2106_v1 = vpop.f32.mrf.mxu1 }
 0x21e   : > { %v2108_v9 = vpop.f32.mrf.mxu1 }
 0x220   : > { %v2110_v10 = vpop.f32.mrf.mxu1 }
 0x222   : > { %v2112_v13 = vpop.f32.mrf.mxu1 }
 0x224   : > { %v2114_v28 = vpop.f32.mrf.mxu1 }
 0x226   : > { %v2116_v32 = vpop.f32.mrf.mxu1 }
 0x228   : > { %v2118_v18 = vpop.f32.mrf.mxu1 }
 0x22a   : > { %v2120_v12 = vpop.f32.mrf.mxu1 }
 0x22c   : > { %v2122_v26 = vpop.f32.mrf.mxu1 }
 0x22e   : > { %v2124_v31 = vpop.f32.mrf.mxu1 }
 0x230   : > { %v2126_v59 = vpop.f32.mrf.mxu1 }
 0x232   : > { %v2128_v38 = vpop.f32.mrf.mxu1 }
 0x234   : > { %v1086_v61 = vpop.f32.mrf.mxu1 }
 0x236   : > { %v1090_v48 = vpop.f32.mrf.mxu1 }
 0x237   : > { %v1091_v27 = vadd.f32 %v1090_v48, %v931_v60  ;;  %v1083_v48 = vadd.f32 %v2126_v59, %v921_v55  ;;  %v901_v59 = vpop.permute.xlu1 %900 }
 0x238   : > { %v1092_v35 = vpop.f32.mrf.mxu1 }
 0x239   : > { %v1093_v17 = vadd.f32 %v1092_v35, %v931_v60  ;;  %vm1139_vm13 = vcmp.ge.f32.partialorder %v1091_v27, 0.0  ;;  %vm1136_vm0 = vcmp.ge.f32.partialorder %v1083_v48, 0.0 }
 0x23a   : > { %v1094_v58 = vpop.f32.mrf.mxu1 }
 0x23b   : > { %v1095_v11 = vadd.f32 %v1094_v58, %v936_v50  ;;  %vm1140_vm12 = vcmp.ge.f32.partialorder %v1093_v17, 0.0 }
 0x23c   : > { %v1096_v46 = vpop.f32.mrf.mxu1 }
 0x23d   : > { %v1097_v8 = vadd.f32 %v1096_v46, %v936_v50  ;;  %v1087_v46 = vadd.f32 %v1086_v61, %v926_v0  ;;  %v1173_v35 = vmul.f32 0.2, %v1095_v11  ;;  %vm1141_vm11 = vcmp.ge.f32.partialorder %v1095_v11, 0.0 }
 0x23e   : > { %v1100_v52 = vpop.f32.mrf.mxu1  ;;  %v1081_v61 = vadd.f32 %v2124_v31, %v921_v55  ;;  %v1171_v50 = vmul.f32 0.2, %v1091_v27  ;;  %v1073_v31 = vadd.f32 %v2118_v18, %v911_v25 }
 0x23f   : > { %v1101_v54 = vadd.f32 %v1100_v52, %v941_v33  ;;  %v1174_v52 = vmul.f32 0.2, %v1097_v8  ;;  %vm1142_vm10 = vcmp.ge.f32.partialorder %v1097_v8, 0.0  ;;  %v1170_v60 = vmul.f32 0.2, %v1087_v46 }
 0x240   : > { %v1102_v47 = vpop.f32.mrf.mxu1  ;;  %vm1138_vm14 = vcmp.ge.f32.partialorder %v1087_v46, 0.0  ;;  %vm1135_vm1 = vcmp.ge.f32.partialorder %v1081_v61, 0.0 }
 0x241   : > { %v1103_v3 = vadd.f32 %v1102_v47, %v941_v33  ;;  %vm1143_vm9 = vcmp.ge.f32.partialorder %v1101_v54, 0.0  ;;  %v1172_v33 = vmul.f32 0.2, %v1093_v17  ;;  %v1202_v55 = vsel %vm1138_vm14, %v1087_v46, %v1170_v60 }
 0x242   : > { %v1104_v63 = vpop.f32.mrf.mxu1 }
 0x243   : > { %v1105_v4 = vadd.f32 %v1104_v63, %v946_v30  ;;  %v1176_v20 = vmul.f32 0.2, %v1103_v3  ;;  %vm1144_vm8 = vcmp.ge.f32.partialorder %v1103_v3, 0.0 }
 0x244   : > { %v1106_v44 = vpop.f32.mrf.mxu1 }
 0x245   : > { %v1107_v57 = vadd.f32 %v1106_v44, %v946_v30  ;;  %v1177_v36 = vmul.f32 0.2, %v1105_v4  ;;  %vm1145_vm7 = vcmp.ge.f32.partialorder %v1105_v4, 0.0  ;;  %v1085_v30 = vadd.f32 %v2128_v38, %v926_v0  ;;  %v906_v44 = vpop.permute.xlu0 %905 }
 0x246   : > { %v1110_v23 = vpop.f32.mrf.mxu1  ;;  %v1208_v63 = vsel %vm1144_vm8, %v1103_v3, %v1176_v20  ;;  %v1077_v38 = vadd.f32 %v2122_v26, %v916_v6  ;;  %v1168_v0 = vmul.f32 0.2, %v1083_v48  ;;  %v1204_v26 = vsel %vm1140_vm12, %v1093_v17, %v1172_v33 }
 0x247   : > { %v1111_v2 = vadd.f32 %v1110_v23, %v951_v49  ;;  %v1178_v15 = vmul.f32 0.2, %v1107_v57  ;;  %vm1146_vm6 = vcmp.ge.f32.partialorder %v1107_v57, 0.0  ;;  %v1209_v47 = vsel %vm1145_vm7, %v1105_v4, %v1177_v36 }
 0x248   : > { %v1112_v45 = vpop.f32.mrf.mxu1  ;;  %vm1137_vm15 = vcmp.ge.f32.partialorder %v1085_v30, 0.0  ;;  %v1065_v18 = vadd.f32 %v2112_v13, %v906_v44 }
 0x249   : > { %v1113_v29 = vadd.f32 %v1112_v45, %v951_v49  ;;  %v1179_v7 = vmul.f32 0.2, %v1111_v2  ;;  %vm1147_vm5 = vcmp.ge.f32.partialorder %v1111_v2, 0.0  ;;  %v1210_v58 = vsel %vm1146_vm6, %v1107_v57, %v1178_v15  ;;  %v896_v3 = vpop.permute.xlu0 %895 }
 0x24a   : > { %v1114_v56 = vpop.f32.mrf.mxu1  ;;  %v1206_v45 = vsel %vm1142_vm10, %v1097_v8, %v1174_v52  ;;  %v1203_v57 = vsel %vm1139_vm13, %v1091_v27, %v1171_v50  ;;  %v1057_v13 = vadd.f32 %v2106_v1, %v896_v3  ;;  %vm1129_vm7 = vcmp.ge.f32.partialorder %v1065_v18, 0.0 }
 0x24b   : > { %v1115_v51 = vadd.f32 %v1114_v56, %v956_v42  ;;  %v1180_v34 = vmul.f32 0.2, %v1113_v29  ;;  %vm1148_vm4 = vcmp.ge.f32.partialorder %v1113_v29, 0.0  ;;  %v1211_v49 = vsel %vm1147_vm5, %v1111_v2, %v1179_v7 }
 0x24c   : > { %v1116_v19 = vpop.f32.mrf.mxu1  ;;  %v1075_v56 = vadd.f32 %v2120_v12, %v916_v6  ;;  %v1071_v2 = vadd.f32 %v2116_v32, %v911_v25  ;;  %v1067_v12 = vadd.f32 %v2114_v28, %v906_v44  ;;  %v1063_v32 = vadd.f32 %v2110_v10, %v901_v59  ;;  %v891_v28 = vpop.permute.xlu1 %890 }
 0x24d   : > { %v1117_v21 = vadd.f32 %v1116_v19, %v956_v42  ;;  %v1181_v62 = vmul.f32 0.2, %v1115_v51  ;;  %vm1149_vm2 = vcmp.ge.f32.partialorder %v1115_v51, 0.0  ;;  %v1212_v22 = vsel %vm1148_vm4, %v1113_v29, %v1180_v34  ;;  %v886_v17 = vpop.permute.xlu0 %885 }
 0x24e   : > { %v1175_v42 = vmul.f32 0.2, %v1101_v54  ;;  %v1169_v29 = vmul.f32 0.2, %v1085_v30  ;;  %v1167_v19 = vmul.f32 0.2, %v1081_v61  ;;  %v1051_v1 = vadd.f32 %v2100_v43, %v891_v28 }
 0x24f   : > { %v1182_v5 = vmul.f32 0.2, %v1117_v21  ;;  %vm1150_vm3 = vcmp.ge.f32.partialorder %v1117_v21, 0.0  ;;  %v1213_v24 = vsel %vm1149_vm2, %v1115_v51, %v1181_v62  ;;  %v1205_v51 = vsel %vm1141_vm11, %v1095_v11, %v1173_v35 }
 0x250   : > { %v1207_v23 = vsel %vm1143_vm9, %v1101_v54, %v1175_v42  ;;  %v1165_v4 = vmul.f32 0.2, %v1075_v56  ;;  %v1201_v62 = vsel %vm1137_vm15, %v1085_v30, %v1169_v29  ;;  %vm1134_vm2 = vcmp.ge.f32.partialorder %v1077_v38, 0.0 }
 0x251   : > { %v1214_v53 = vsel %vm1150_vm3, %v1117_v21, %v1182_v5  ;;  %v1166_v21 = vmul.f32 0.2, %v1077_v38  ;;  %v1164_v34 = vmul.f32 0.2, %v1073_v31  ;;  %vm1133_vm3 = vcmp.ge.f32.partialorder %v1075_v56, 0.0 }
 0x252   : > { %1235 = vmatprep.subr.mxu0 %v1214_v53  ;;  %v1200_v5 = vsel %vm1136_vm0, %v1083_v48, %v1168_v0  ;;  %v1061_v54 = vadd.f32 %v2108_v9, %v901_v59  ;;  %v1163_v7 = vmul.f32 0.2, %v1071_v2  ;;  %v1199_v8 = vsel %vm1135_vm1, %v1081_v61, %v1167_v19 }
 0x253   : > { %1236 = vmatpush1.msra.mxu0 %v1213_v24  ;;  %vm1132_vm4 = vcmp.ge.f32.partialorder %v1073_v31, 0.0  ;;  %v1162_v15 = vmul.f32 0.2, %v1067_v12  ;;  %vm1131_vm5 = vcmp.ge.f32.partialorder %v1071_v2, 0.0  ;;  %v1198_v10 = vsel %vm1134_vm2, %v1077_v38, %v1166_v21  ;;  %v1215_v38 = vld [vmem:[%s2200_s6] sm:$0x3f] }
 0x254   : > { %1237 = vmatprep.subr.mxu0 %v1212_v22  ;;  %v1055_v53 = vadd.f32 %v2104_v16, %v896_v3  ;;  %v1161_v6 = vmul.f32 0.2, %v1065_v18  ;;  %v1197_v11 = vsel %vm1133_vm3, %v1075_v56, %v1165_v4  ;;  %vm1130_vm6 = vcmp.ge.f32.partialorder %v1067_v12, 0.0 }
 0x255   : > { %1238 = vmatpush1.msra.mxu0 %v1211_v49  ;;  %v1053_v9 = vadd.f32 %v2102_v14, %v891_v28  ;;  %v1160_v36 = vmul.f32 0.2, %v1063_v32  ;;  %v1196_v24 = vsel %vm1132_vm4, %v1073_v31, %v1164_v34  ;;  %v1159_v20 = vmul.f32 0.2, %v1061_v54  ;;  %v881_v14 = vpop.permute.xlu1 %880 }
 0x256   : > { %1239 = vmatprep.subr.mxu0 %v1210_v58  ;;  %v1195_v22 = vsel %vm1131_vm5, %v1071_v2, %v1163_v7  ;;  %vm1128_vm8 = vcmp.ge.f32.partialorder %v1063_v32, 0.0  ;;  %v1047_v16 = vadd.f32 %v2098_v41, %v886_v17  ;;  %v1158_v25 = vmul.f32 0.2, %v1057_v13 }
 0x257   : > { %1240 = vmatpush1.msra.mxu0 %v1209_v47  ;;  %vm1127_vm9 = vcmp.ge.f32.partialorder %v1061_v54, 0.0  ;;  %v1194_v27 = vsel %vm1130_vm6, %v1067_v12, %v1162_v15  ;;  %v1045_v42 = vadd.f32 %v2096_v40, %v886_v17  ;;  %v1157_v49 = vmul.f32 0.2, %v1055_v53 }
 0x258   : > { %1241 = vmatprep.subr.mxu0 %v1208_v63  ;;  %v1193_v46 = vsel %vm1129_vm7, %v1065_v18, %v1161_v6  ;;  %vm1126_vm10 = vcmp.ge.f32.partialorder %v1057_v13, 0.0  ;;  %v1043_v43 = vadd.f32 %v2094_v39, %v881_v14  ;;  %v1156_v52 = vmul.f32 0.2, %v1053_v9 }
 0x259   : > { %1242 = vmatpush1.msra.mxu0 %v1207_v23  ;;  %vm1125_vm11 = vcmp.ge.f32.partialorder %v1055_v53, 0.0  ;;  %v1192_v41 = vsel %vm1128_vm8, %v1063_v32, %v1160_v36  ;;  %v1041_v58 = vadd.f32 %v2092_v37, %v881_v14  ;;  %v1155_v30 = vmul.f32 0.2, %v1051_v1 }
 0x25a   : > { %1243 = vmatprep.subr.mxu0 %v1206_v45  ;;  %v1191_v35 = vsel %vm1127_vm9, %v1061_v54, %v1159_v20  ;;  %vm1124_vm12 = vcmp.ge.f32.partialorder %v1053_v9, 0.0  ;;  %v1154_v40 = vmul.f32 0.2, %v1047_v16  ;;  %vm1123_vm13 = vcmp.ge.f32.partialorder %v1051_v1, 0.0 }
 0x25b   : > { %1244 = vmatpush1.msra.mxu0 %v1205_v51  ;;  %v1190_v47 = vsel %vm1126_vm10, %v1057_v13, %v1158_v25  ;;  %v1153_v48 = vmul.f32 0.2, %v1045_v42  ;;  %v1189_v33 = vsel %vm1125_vm11, %v1055_v53, %v1157_v49  ;;  %vm1122_vm14 = vcmp.ge.f32.partialorder %v1047_v16, 0.0 }
 0x25c   : > { %1245 = vmatprep.subr.mxu0 %v1204_v26  ;;  %v1152_v39 = vmul.f32 0.2, %v1043_v43  ;;  %vm1121_vm15 = vcmp.ge.f32.partialorder %v1045_v42, 0.0  ;;  %v1188_v63 = vsel %vm1124_vm12, %v1053_v9, %v1156_v52  ;;  %v1151_v44 = vmul.f32 0.2, %v1041_v58 }
 0x25d   : > { %1246 = vmatpush1.msra.mxu0 %v1203_v57  ;;  %v1187_v37 = vsel %vm1123_vm13, %v1051_v1, %v1155_v30  ;;  %vm1120_vm0 = vcmp.ge.f32.partialorder %v1043_v43, 0.0  ;;  %vm1119_vm1 = vcmp.ge.f32.partialorder %v1041_v58, 0.0  ;;  %v1186_v61 = vsel %vm1122_vm14, %v1047_v16, %v1154_v40 }
 0x25e   : > { %1247 = vmatprep.subr.mxu0 %v1202_v55  ;;  %v1185_v50 = vsel %vm1121_vm15, %v1045_v42, %v1153_v48  ;;  %v1184_v23 = vsel %vm1120_vm0, %v1043_v43, %v1152_v39  ;;  %v1183_v60 = vsel %vm1119_vm1, %v1041_v58, %v1151_v44  ;;  %v1229_v45 = vlaneseq }
 0x25f   : > { %1248 = vmatpush1.msra.mxu0 %v1201_v62  ;;  %v1232_v56 = vstv %s1216_s11  ;;  %v1233_v29 = vstv %s1224_s25  ;;  %v1320_v32 = vstv %s1228_s13  ;;  %vm1334_vm3 = vcmask 1040384  }
 0x260   : > { %1249 = vmatprep.subr.mxu0 %v1200_v5  ;;  %v1230_v59 = vshrl.u32 %v1229_v45, 7  ;;  %vm1335_vm4 = vcmask 1044484  }
 0x261   : > { %1250 = vmatpush1.msra.mxu0 %v1199_v8  ;;  %vm1336_vm5 = vmor %vm1334_vm3, %vm1335_vm4 }
 0x262   : > { %1251 = vmatprep.subr.mxu0 %v1198_v10  ;;  %vm1231_vm2 = vcmp.lt.s32.totalorder %v1230_v59, 3 }
 0x263   : > { %1252 = vmatpush1.msra.mxu0 %v1197_v11  ;;  %v1234_v51 = vsel %vm1231_vm2, %v1232_v56, %v1233_v29 }
 0x264   : > { %1253 = vmatprep.subr.mxu0 %v1196_v24 }
 0x265   : > { %1254 = vmatpush1.msra.mxu0 %v1195_v22 }
 0x266   : > { %1255 = vmatprep.subr.mxu0 %v1194_v27 }
 0x267   : > { %1256 = vmatpush1.msra.mxu0 %v1193_v46 }
 0x268   : > { %1257 = vmatprep.subr.mxu0 %v1192_v41 }
 0x269   : > { %1258 = vmatpush1.msra.mxu0 %v1191_v35 }
 0x26a   : > { %1259 = vmatprep.subr.mxu0 %v1190_v47 }
 0x26b   : > { %1260 = vmatpush1.msra.mxu0 %v1189_v33 }
 0x26c   : > { %1261 = vmatprep.subr.mxu0 %v1188_v63 }
 0x26d   : > { %1262 = vmatpush1.msra.mxu0 %v1187_v37 }
 0x26e   : > { %1263 = vmatprep.subr.mxu0 %v1186_v61 }
 0x26f   : > { %1264 = vmatpush1.msra.mxu0 %v1185_v50 }
 0x270   : > { %1265 = vmatprep.subr.mxu0 %v1184_v23 }
 0x271   : > { %1266 = vmatpush1.msra.mxu0 %v1183_v60 }
 0x272   : > { %1300 = vmatmul.mubr.f32.vlgmr.msra.gmra.mxu0 %v1215_v38 }
 0x332   : > { %v1301_v31 = vpop.f32.mrf.mxu0 }
 0x333   : > { %v1302_v0 = vadd.f32 %v1301_v31, %v1234_v51 }
 0x334   : > { %v1303_v26 = vpop.f32.mrf.mxu0 }
 0x335   : > { %v1306_v2 = vsub.f32 0.0, %v1302_v0  ;;  %v1304_v19 = vadd.f32 %v1303_v26, %v1234_v51 }
 0x337   : > { %v1308_v57 = vmul.f32 1.442695, %v1306_v2  ;;  %v1307_v12 = vsub.f32 0.0, %v1304_v19 }
 0x339   : > { %1608 = vpow2.f32 %v1308_v57  ;;  %v1310_v21 = vmul.f32 1.442695, %v1307_v12 }
 0x33b   : > { %1610 = vpow2.f32 %v1310_v21 }
 0x346   : > { %v1609_v55 = vpop.eup %1608 }
 0x347   : > { %v1312_v3 = vadd.f32 1.0, %v1609_v55 }
 0x348   : > { %v1611_v18 = vpop.eup %1610 }
 0x349   : > { %1612 = vrcp.f32 %v1312_v3  ;;  %v1313_v4 = vadd.f32 1.0, %v1611_v18 }
 0x34b   : > { %1614 = vrcp.f32 %v1313_v4 }
 0x356   : > { %v1613_v62 = vpop.eup %1612 }
 0x357   : > { %v1547_v34 = vadd.f32 -0.5, %v1613_v62 }
 0x358   : > { %v1615_v5 = vpop.eup %1614 }
 0x359   : > { %v1321_v28 = vmul.f32 %v1547_v34, %v1320_v32  ;;  %v1548_v54 = vadd.f32 -0.5, %v1615_v5 }
 0x35b   : > { %v1322_v7 = vmul.f32 %v1548_v54, %v1320_v32  ;;  %v1323_v8 = vadd.f32 1.0, %v1321_v28 }
 0x35d   : > { %v1324_v13 = vadd.f32 1.0, %v1322_v7  ;;  %v1332_v15 = vcombine.low %v1321_v28, %v1322_v7  ;;  %v1333_v10 = vcombine.high %v1321_v28, %v1322_v7 }
 0x35f   : > { %v1327_v53 = vcombine.low %v1323_v8, %v1324_v13  ;;  %v1549_v6 = vrot.slane %v1332_v15, 11  ;;  %v1339_v11 = vrot.slane %v1333_v10, 7 }
 0x361   : > { %1329 = vst [vmem:[%s391_s16] sm:$0x77] %v1327_v53  ;;  %v1340_v9 = vsel %vm1336_vm5, %v1549_v6, %v1339_v11 }
 0x362   : > { %1342 = vst [vmem:[%s401_s20] sm:$0x77] %v1340_v9 }
 0x363 PF: > { %s20_s29 = sadd.s32 1, %s1657_s29   ;;  %s2205_s27 = smov %s1653_s28 }
 0x364   : > { %p17_p2 = scmp.ge.s32.totalorder %s20_s29, 4   ;;  %s2206_s28 = smov %s2208_s9 }
 0x366   :  { %19 = sbr.rel (!%p17_p2) target bundleno = 2 (0x2), region = 98 }
 0x36b   :  { %1398 = vsyncpa [#allocation3], 1 }
 0x36c   :  { %1400 = vsyncpa [#allocation3 + $0x1], 1 }

</bundles_post_ra>
